<compile_context>
chip_gen: v7x
topology: tpu7x:2x2x1
jax: 0.10.0
libtpu: 0.0.40
codegen_flags: <defaults>
</compile_context>

<pallas_src>
import jax
import jax.numpy as jnp
from jax.experimental import pallas as pl
from jax.experimental.pallas import tpu as pltpu


def _round_up(x, m):
    return (x + m - 1) // m * m


def _pick_spatial_tile(S, B, bytes_per_voxel, tile_budget_bytes=12 * 1024 * 1024):
    """Spatial (lane-axis) tile size.

    Targets ~tile_budget_bytes of double-buffered input+output block memory.
    Returns either the full S (single block; legal for any S) or a multiple of
    128 (a partial last block is masked by Pallas).
    """
    t = (tile_budget_bytes // max(bytes_per_voxel, 1)) // 128 * 128
    t = max(t, 128)
    if S <= t:
        if B == 1 and S >= 256:
            # Split the spatial axis so there are >=2 grid iterations
            # (both v7x TensorCores get work even with batch 1).
            return _round_up(-(-S // 2), 128)
        return S
    return t


# ---------------------------------------------------------------------------
# Fused kernel: 1x1x1 conv (channel matmul + bias) -> softmax over channels
# ---------------------------------------------------------------------------
def _conv1x1_softmax_kernel(x_ref, w_ref, b_ref, o_ref):
    # x_ref: (1, Cin, tS)  activations (channels on sublanes, spatial on lanes)
    # w_ref: (L, Cin)      1x1x1 conv weight (same dtype as x)
    # b_ref: (L, 1)        conv bias (f32)
    # o_ref: (1, L, tS)    softmax probabilities over the label axis
    x = x_ref[0]                       # native dtype straight into the MXU
    w = w_ref[...]

    # 1x1x1 Conv3d == per-voxel channel contraction; accumulate in f32.
    y = jax.lax.dot_general(w, x, (((1,), (0,)), ((), ())),
                            preferred_element_type=jnp.float32)      # (L, tS)
    y = y + b_ref[...]                                               # f32 bias

    # Channel softmax (sublane axis), f32 epilogue.
    y = y - jnp.max(y, axis=0, keepdims=True)
    e = jnp.exp(y)
    denom = jnp.sum(e, axis=0, keepdims=True)                        # (1, tS)
    r = pl.reciprocal(denom, approx=True)        # EUP fast path
    r = r * (2.0 - denom * r)                    # Newton step 1
    r = r * (2.0 - denom * r)                    # Newton step 2 (exact to f32)
    o_ref[0] = (e * r).astype(o_ref.dtype)


def output_transition_forward(x, w, b):
    """x: (B, Cin, D, H, W); w: (L, Cin, 1, 1, 1); b: (L,) -> (B, L, D, H, W)."""
    B, Cin, D, H, W = x.shape
    L = w.shape[0]
    S = D * H * W
    out_dtype = x.dtype

    # Stay in NCDHW: pure reshapes only (no relayout, no activation padding).
    # Lane axis = flattened spatial (lane-dense loads AND stores).
    x3 = x.reshape(B, Cin, S)
    w2 = w.reshape(L, Cin).astype(x.dtype)      # matmul operands share a dtype (bf16-friendly)
    b2 = b.reshape(L, 1).astype(jnp.float32)    # bias applied in the f32 epilogue

    x_item = jnp.dtype(x.dtype).itemsize
    o_item = jnp.dtype(out_dtype).itemsize
    bytes_per_voxel = 2 * (Cin * x_item + L * o_item)   # double-buffered in+out blocks
    tS = _pick_spatial_tile(S, B, bytes_per_voxel)
    grid = (B, pl.cdiv(S, tS))                          # ragged S: partial last tile is masked

    out = pl.pallas_call(
        _conv1x1_softmax_kernel,
        out_shape=jax.ShapeDtypeStruct((B, L, S), out_dtype),
        grid=grid,
        in_specs=[
            pl.BlockSpec((1, Cin, tS), lambda bi, si: (bi, 0, si)),
            pl.BlockSpec((L, Cin), lambda bi, si: (0, 0)),
            pl.BlockSpec((L, 1), lambda bi, si: (0, 0)),
        ],
        out_specs=pl.BlockSpec((1, L, tS), lambda bi, si: (bi, 0, si)),
        compiler_params=pltpu.CompilerParams(
            dimension_semantics=("parallel", "parallel"),
            vmem_limit_bytes=32 * 1024 * 1024),
    )(x3, w2, b2)

    return out.reshape(B, L, D, H, W)


# ---------------------------------------------------------------------------
# Pure-JAX reference (for correctness check only)
# ---------------------------------------------------------------------------
def _reference(x, w, b):
    L, Cin = w.shape[0], w.shape[1]
    y = jnp.einsum('bcdhw,lc->bldhw', x, w.reshape(L, Cin))
    y = y + b.reshape(1, L, 1, 1, 1)
    return jax.nn.softmax(y, axis=1)


if __name__ == "__main__":
    key = jax.random.PRNGKey(0)
    kx, kw, kb = jax.random.split(key, 3)

    # Small shapes consistent with the module: OutputTransition(inChans=4, n_labels=4)
    B, IN_CHANS, N_LABELS, SP = 2, 4, 4, 16
    x = jax.random.normal(kx, (B, IN_CHANS, SP, SP, SP), jnp.float32)
    w = 0.1 * jax.random.normal(kw, (N_LABELS, IN_CHANS, 1, 1, 1), jnp.float32)
    b = 0.1 * jax.random.normal(kb, (N_LABELS,), jnp.float32)

    fwd = jax.jit(output_transition_forward)
    out = fwd(x, w, b)
    jax.block_until_ready(out)

    assert out.shape == (B, N_LABELS, SP, SP, SP)

    ref = _reference(x, w, b)
    err = float(jnp.max(jnp.abs(out - ref)))
    assert err < 1e-5, f"max abs error vs reference: {err}"

    # softmax sanity: probabilities over the channel dim sum to 1
    sums = jnp.sum(out, axis=1)
    assert float(jnp.max(jnp.abs(sums - 1.0))) < 1e-5

    print("KERNEL_OK")
</pallas_src>

<mosaic_0001>
module attributes {stable_mosaic.version = 11 : i64} {
  func.func @_conv1x1_softmax_kernel(%arg0: i32, %arg1: i32, %arg2: memref<1x4x4096xf32, #tpu.memory_space<vmem>>, %arg3: memref<4x4xf32, #tpu.memory_space<vmem>>, %arg4: memref<4x1xf32, #tpu.memory_space<vmem>>, %arg5: memref<1x4x4096xf32, #tpu.memory_space<vmem>>) attributes {dimension_semantics = [#tpu.dimension_semantics<parallel>, #tpu.dimension_semantics<parallel>], iteration_bounds = array<i64: 2, 1>, scalar_prefetch = 0 : i64, scratch_operands = 0 : i64, tpu.core_type = #tpu.core_type<tc>, window_params = [{transform_indices = @transform_0, window_bounds = array<i64: 1, 4, 4096>}, {pipeline_mode = #tpu.pipeline_mode<synchronous>, transform_indices = @transform_1, window_bounds = array<i64: 4, 4>}, {pipeline_mode = #tpu.pipeline_mode<synchronous>, transform_indices = @transform_2, window_bounds = array<i64: 4, 1>}, {transform_indices = @transform_3, window_bounds = array<i64: 1, 4, 4096>}]} {
    %c0 = arith.constant 0 : index
    %c0_0 = arith.constant 0 : index
    %c0_1 = arith.constant 0 : index
    %0 = vector.load %arg2[%c0, %c0_0, %c0_1] : memref<1x4x4096xf32, #tpu.memory_space<vmem>>, vector<1x4x4096xf32>
    %1 = vector.shape_cast %0 : vector<1x4x4096xf32> to vector<4x4096xf32>
    %c0_2 = arith.constant 0 : index
    %c0_3 = arith.constant 0 : index
    %2 = vector.load %arg3[%c0_2, %c0_3] : memref<4x4xf32, #tpu.memory_space<vmem>>, vector<4x4xf32>
    %cst = arith.constant dense<0.000000e+00> : vector<4x4096xf32>
    %3 = tpu.matmul %2, %1, %cst {dimension_numbers = #tpu.dot_dimension_numbers<[1], [0], [0], [1], [0, 0, 1, 1], [], []>} : vector<4x4xf32>, vector<4x4096xf32>, vector<4x4096xf32> -> vector<4x4096xf32>
    %c0_4 = arith.constant 0 : index
    %c0_5 = arith.constant 0 : index
    %4 = vector.load %arg4[%c0_4, %c0_5] : memref<4x1xf32, #tpu.memory_space<vmem>>, vector<4x1xf32>
    %5 = vector.broadcast %4 : vector<4x1xf32> to vector<4x4096xf32>
    %6 = arith.addf %3, %5 : vector<4x4096xf32>
    %cst_6 = arith.constant dense<0xFF800000> : vector<4096xf32>
    %7 = vector.multi_reduction <maximumf>, %6, %cst_6 [0] : vector<4x4096xf32> to vector<4096xf32>
    %8 = vector.shape_cast %7 : vector<4096xf32> to vector<1x4096xf32>
    %9 = vector.broadcast %8 : vector<1x4096xf32> to vector<4x4096xf32>
    %10 = arith.subf %6, %9 : vector<4x4096xf32>
    %11 = math.exp %10 : vector<4x4096xf32>
    %cst_7 = arith.constant dense<0.000000e+00> : vector<4096xf32>
    %12 = vector.multi_reduction <add>, %11, %cst_7 [0] : vector<4x4096xf32> to vector<4096xf32>
    %13 = vector.shape_cast %12 : vector<4096xf32> to vector<1x4096xf32>
    %14 = tpu.reciprocal %13 {approx = true} : vector<1x4096xf32> -> vector<1x4096xf32>
    %15 = arith.mulf %13, %14 : vector<1x4096xf32>
    %cst_8 = arith.constant 2.000000e+00 : f32
    %16 = vector.broadcast %cst_8 : f32 to vector<1x4096xf32>
    %17 = arith.subf %16, %15 : vector<1x4096xf32>
    %18 = arith.mulf %14, %17 : vector<1x4096xf32>
    %19 = arith.mulf %13, %18 : vector<1x4096xf32>
    %cst_9 = arith.constant 2.000000e+00 : f32
    %20 = vector.broadcast %cst_9 : f32 to vector<1x4096xf32>
    %21 = arith.subf %20, %19 : vector<1x4096xf32>
    %22 = arith.mulf %18, %21 : vector<1x4096xf32>
    %23 = vector.broadcast %22 : vector<1x4096xf32> to vector<4x4096xf32>
    %24 = arith.mulf %11, %23 : vector<4x4096xf32>
    %c0_10 = arith.constant 0 : index
    %c0_11 = arith.constant 0 : index
    %c0_12 = arith.constant 0 : index
    %25 = vector.load %arg5[%c0_10, %c0_11, %c0_12] : memref<1x4x4096xf32, #tpu.memory_space<vmem>>, vector<1x4x4096xf32>
    %26 = vector.shape_cast %25 : vector<1x4x4096xf32> to vector<4x4096xf32>
    %27 = vector.shape_cast %24 : vector<4x4096xf32> to vector<1x4x4096xf32>
    tpu.vector_store %arg5[%c0_10, %c0_11, %c0_12], %27 {strides = array<i32>} : memref<1x4x4096xf32, #tpu.memory_space<vmem>>, vector<1x4x4096xf32>,
    return
  }
  func.func @transform_0(%arg0: i32, %arg1: i32) -> (i32, i32, i32) {
    %c0_i32 = arith.constant 0 : i32
    %c0_i32_0 = arith.constant 0 : i32
    return %arg0, %c0_i32, %arg1 : i32, i32, i32
  }
  func.func @transform_1(%arg0: i32, %arg1: i32) -> (i32, i32) {
    %c0_i32 = arith.constant 0 : i32
    %c0_i32_0 = arith.constant 0 : i32
    %c0_i32_1 = arith.constant 0 : i32
    return %c0_i32, %c0_i32_0 : i32, i32
  }
  func.func @transform_2(%arg0: i32, %arg1: i32) -> (i32, i32) {
    %c0_i32 = arith.constant 0 : i32
    %c0_i32_0 = arith.constant 0 : i32
    %c0_i32_1 = arith.constant 0 : i32
    return %c0_i32, %c0_i32_0 : i32, i32
  }
  func.func @transform_3(%arg0: i32, %arg1: i32) -> (i32, i32, i32) {
    %c0_i32 = arith.constant 0 : i32
    %c0_i32_0 = arith.constant 0 : i32
    return %arg0, %c0_i32, %arg1 : i32, i32, i32
  }
}

</mosaic_0001>

<bundles_post_ra>
// kernel: output_transition_forward.1
= control target key start
LH: loop header
LB: loop body
LE: loop exit
PB: predicated region body
PF: predicated region fallthrough
CT: control target
= control target key end

     0   :  { %s2715_s12 = smov 0   ;;  %s2717_s13 = smov 0   ;;  %s3493_s0 = inlined_call_operand.vmem [shape: f32[2,4,4096], index: 0, kind: input, shape index: {}]   ;;  %s3494_s1 = inlined_call_operand.vmem [shape: f32[4,4], index: 1, kind: input, shape index: {}]   ;;  %s3495_s2 = inlined_call_operand.vmem [shape: f32[4,1], index: 2, kind: input, shape index: {}]   ;;  %s3496_s3 = inlined_call_operand.vmem [shape: f32[2,4,4096], index: 3, kind: output, shape index: {}]  }
   0x1   :  { %s2719_s14 = smov 0  }
   0x2 LB: > { %s25_s15 = sadd.s32 1, %s2687_s13  ;;  %p2441_p0 = scmp.ge.s32.totalorder %s2691_s14, 1  ;;  %s2691_s14 = sphi %s2719_s14, %s13_s14   ;;  %s2687_s13 = sphi %s2717_s13, %s3512_s13   ;;  %s2683_s12 = sphi %s2715_s12, %s3511_s12  }
   0x3   : > { %p27_p1 = scmp.ge.s32.totalorder %s25_s15, 2  ;;  %p158_p2 = scmp.lt.s32.totalorder %s2691_s14, 3 }
   0x5   : > { %s3514_s15 = smov (%p27_p1, %s25_s15), 0  ;;  %p159_p3 = pnand %p2441_p0, %p158_p2 }
   0x7   : > { %162 = sbr.rel (%p159_p3) target bundleno = 483 (0x1e3), region = 32 }
   0xe   : > { %p191_p4 = scmp.lt.s32.totalorder %s2683_s12, 1  ;;  %v2693_v0 = vmov 0.0   ;;  %v227_v1 = vld [vmem:[%s3495_s2] sm:$0xf]  ;;  %v2694_v2 = vmov 0   ;;  %vm269_vm0 = vcmask 1043456  }
   0xf   : > { %398 = vmatprep.mubr.f32.mxu0 %v2693_v0  ;;  %469 = vmatprep.mubr.f32.mxu1 %v2693_v0  ;;  %v2755_v9 = vld [vmem:[%s3494_s1] sm:$0xf]  ;;  %vm265_vm1 = vcmask 31744  }
  0x10   : > { %s3516_s12 = smov (!%p191_p4, %s2683_s12), 1  ;;  %2524 = vset.pattern.permute.xlu0 %v2694_v2 }
  0x11   : > { %230 = vperm.xlu0 %2524, %v227_v1   ;;  %s2496_s18 = sshll.u32 %s3516_s12, 7 }
  0x12   : > { %s2746_s21 = scalar_lea.vmem %s3493_s0, %s2496_s18  ;;  %s3121_s26 = scalar_lea.vmem %s3496_s3, %s2496_s18 }
  0x13   : > { %v210_v3 = vld [vmem:[%s2746_s21] sm:$0xff]  ;;  %v211_v4 = vld [vmem:[%s2746_s21 + $0x8] sm:$0xff]  ;;  %v212_v5 = vld [vmem:[%s2746_s21 + $0x10] sm:$0xff] }
  0x14   : > { %v249_v6 = vcombine.high %v210_v3, %v210_v3  ;;  %v250_v7 = vcombine.high %v211_v4, %v211_v4  ;;  %v213_v8 = vld [vmem:[%s2746_s21 + $0x18] sm:$0xff]  ;;  %v251_v10 = vcombine.high %v212_v5, %v212_v5  ;;  %v214_v12 = vld [vmem:[%s2746_s21 + $0x20] sm:$0xff]  ;;  %v215_v13 = vld [vmem:[%s2746_s21 + $0x28] sm:$0xff] }
  0x15   : > { %v252_v11 = vcombine.high %v213_v8, %v213_v8  ;;  %v253_v14 = vcombine.high %v214_v12, %v214_v12  ;;  %v254_v15 = vcombine.high %v215_v13, %v215_v13  ;;  %v216_v16 = vld [vmem:[%s2746_s21 + $0x30] sm:$0xff]  ;;  %v217_v17 = vld [vmem:[%s2746_s21 + $0x38] sm:$0xff]  ;;  %v218_v20 = vld [vmem:[%s2746_s21 + $0x40] sm:$0xff] }
  0x16   : > { %2446 = vmatprep.subr.msk.mxu0 %vm269_vm0, %v249_v6  ;;  %2449 = vmatprep.subr.msk.mxu1 %vm269_vm0, %v250_v7  ;;  %v255_v18 = vcombine.high %v216_v16, %v216_v16  ;;  %v256_v19 = vcombine.high %v217_v17, %v217_v17  ;;  %v219_v21 = vld [vmem:[%s2746_s21 + $0x48] sm:$0xff]  ;;  %v257_v22 = vcombine.high %v218_v20, %v218_v20  ;;  %v220_v24 = vld [vmem:[%s2746_s21 + $0x50] sm:$0xff]  ;;  %v221_v25 = vld [vmem:[%s2746_s21 + $0x58] sm:$0xff] }
  0x17   : > { %2447 = vmatpush1.msk.msra.mxu0 %vm269_vm0, %v210_v3  ;;  %2450 = vmatpush1.msk.msra.mxu1 %vm269_vm0, %v211_v4  ;;  %v258_v23 = vcombine.high %v219_v21, %v219_v21  ;;  %v259_v26 = vcombine.high %v220_v24, %v220_v24  ;;  %v260_v27 = vcombine.high %v221_v25, %v221_v25  ;;  %v222_v28 = vld [vmem:[%s2746_s21 + $0x60] sm:$0xff]  ;;  %v223_v29 = vld [vmem:[%s2746_s21 + $0x68] sm:$0xff]  ;;  %v224_v32 = vld [vmem:[%s2746_s21 + $0x70] sm:$0xff] }
  0x18   : > { %2448 = vmatmul.mubr.msk.f32.vlgmr.msra.gmra.mrb[0].mxu0 %vm265_vm1, %v2755_v9  ;;  %2451 = vmatmul.mubr.msk.f32.vlgmr.msra.gmra.mrb[0].mxu1 %vm265_vm1, %v2755_v9  ;;  %v261_v30 = vcombine.high %v222_v28, %v222_v28  ;;  %v262_v31 = vcombine.high %v223_v29, %v223_v29  ;;  %v225_v33 = vld [vmem:[%s2746_s21 + $0x78] sm:$0xff]  ;;  %v263_v34 = vcombine.high %v224_v32, %v224_v32 }
  0x19   : > { %2452 = vmatprep.subr.msk.mxu0 %vm269_vm0, %v251_v10  ;;  %2455 = vmatprep.subr.msk.mxu1 %vm269_vm0, %v252_v11  ;;  %v264_v35 = vcombine.high %v225_v33, %v225_v33 }
  0x1a   : > { %2453 = vmatpush1.msk.msra.mxu0 %vm269_vm0, %v212_v5  ;;  %2456 = vmatpush1.msk.msra.mxu1 %vm269_vm0, %v213_v8 }
  0x1b   : > { %540 = vmatprep.mubr.f32.mxu0 %v2693_v0  ;;  %611 = vmatprep.mubr.f32.mxu1 %v2693_v0 }
  0x1c   : > { %2454 = vmatmul.mubr.msk.f32.vlgmr.msra.gmra.mrb[2].mxu0 %vm265_vm1, %v2755_v9  ;;  %2457 = vmatmul.mubr.msk.f32.vlgmr.msra.gmra.mrb[2].mxu1 %vm265_vm1, %v2755_v9 }
  0x1d   : > { %2458 = vmatprep.subr.msk.mxu0 %vm269_vm0, %v253_v14  ;;  %2461 = vmatprep.subr.msk.mxu1 %vm269_vm0, %v254_v15 }
  0x1e   : > { %2459 = vmatpush1.msk.msra.mxu0 %vm269_vm0, %v214_v12  ;;  %2462 = vmatpush1.msk.msra.mxu1 %vm269_vm0, %v215_v13 }
  0x1f   : > { %682 = vmatprep.mubr.f32.mxu0 %v2693_v0  ;;  %753 = vmatprep.mubr.f32.mxu1 %v2693_v0 }
  0x20   : > { %2460 = vmatmul.mubr.msk.f32.vlgmr.msra.gmra.mrb[4].mxu0 %vm265_vm1, %v2755_v9  ;;  %2463 = vmatmul.mubr.msk.f32.vlgmr.msra.gmra.mrb[4].mxu1 %vm265_vm1, %v2755_v9 }
  0x21   : > { %2464 = vmatprep.subr.msk.mxu0 %vm269_vm0, %v255_v18  ;;  %2467 = vmatprep.subr.msk.mxu1 %vm269_vm0, %v256_v19 }
  0x22   : > { %2465 = vmatpush1.msk.msra.mxu0 %vm269_vm0, %v216_v16  ;;  %2468 = vmatpush1.msk.msra.mxu1 %vm269_vm0, %v217_v17 }
  0x23   : > { %824 = vmatprep.mubr.f32.mxu0 %v2693_v0  ;;  %895 = vmatprep.mubr.f32.mxu1 %v2693_v0 }
  0x24   : > { %2466 = vmatmul.mubr.msk.f32.vlgmr.msra.gmra.mrb[6].mxu0 %vm265_vm1, %v2755_v9  ;;  %2469 = vmatmul.mubr.msk.f32.vlgmr.msra.gmra.mrb[6].mxu1 %vm265_vm1, %v2755_v9 }
  0x25   : > { %2470 = vmatprep.subr.msk.mxu0 %vm269_vm0, %v257_v22  ;;  %2473 = vmatprep.subr.msk.mxu1 %vm269_vm0, %v258_v23 }
  0x26   : > { %2471 = vmatpush1.msk.msra.mxu0 %vm269_vm0, %v218_v20  ;;  %2474 = vmatpush1.msk.msra.mxu1 %vm269_vm0, %v219_v21 }
  0x27   : > { %966 = vmatprep.mubr.f32.mxu0 %v2693_v0  ;;  %1037 = vmatprep.mubr.f32.mxu1 %v2693_v0 }
  0x28   : > { %2472 = vmatmul.mubr.msk.f32.vlgmr.msra.gmra.mrb[8].mxu0 %vm265_vm1, %v2755_v9  ;;  %2475 = vmatmul.mubr.msk.f32.vlgmr.msra.gmra.mrb[8].mxu1 %vm265_vm1, %v2755_v9 }
  0x29   : > { %2476 = vmatprep.subr.msk.mxu0 %vm269_vm0, %v259_v26  ;;  %2479 = vmatprep.subr.msk.mxu1 %vm269_vm0, %v260_v27 }
  0x2a   : > { %2477 = vmatpush1.msk.msra.mxu0 %vm269_vm0, %v220_v24  ;;  %2480 = vmatpush1.msk.msra.mxu1 %vm269_vm0, %v221_v25 }
  0x2b   : > { %1108 = vmatprep.mubr.f32.mxu0 %v2693_v0  ;;  %1179 = vmatprep.mubr.f32.mxu1 %v2693_v0 }
  0x2c   : > { %2478 = vmatmul.mubr.msk.f32.vlgmr.msra.gmra.mrb[10].mxu0 %vm265_vm1, %v2755_v9  ;;  %2481 = vmatmul.mubr.msk.f32.vlgmr.msra.gmra.mrb[10].mxu1 %vm265_vm1, %v2755_v9 }
  0x2d   : > { %2482 = vmatprep.subr.msk.mxu0 %vm269_vm0, %v261_v30  ;;  %2485 = vmatprep.subr.msk.mxu1 %vm269_vm0, %v262_v31 }
  0x2e   : > { %2483 = vmatpush1.msk.msra.mxu0 %vm269_vm0, %v222_v28  ;;  %2486 = vmatpush1.msk.msra.mxu1 %vm269_vm0, %v223_v29 }
  0x2f   : > { %1250 = vmatprep.mubr.f32.mxu0 %v2693_v0  ;;  %1321 = vmatprep.mubr.f32.mxu1 %v2693_v0 }
  0x30   : > { %2484 = vmatmul.mubr.msk.f32.vlgmr.msra.gmra.mrb[12].mxu0 %vm265_vm1, %v2755_v9  ;;  %2487 = vmatmul.mubr.msk.f32.vlgmr.msra.gmra.mrb[12].mxu1 %vm265_vm1, %v2755_v9 }
  0x31   : > { %2488 = vmatprep.subr.msk.mxu0 %vm269_vm0, %v263_v34  ;;  %2491 = vmatprep.subr.msk.mxu1 %vm269_vm0, %v264_v35 }
  0x32   : > { %2489 = vmatpush1.msk.msra.mxu0 %vm269_vm0, %v224_v32  ;;  %2492 = vmatpush1.msk.msra.mxu1 %vm269_vm0, %v225_v33 }
  0x33   : > { %1392 = vmatprep.mubr.f32.mxu0 %v2693_v0  ;;  %1463 = vmatprep.mubr.f32.mxu1 %v2693_v0 }
  0x34   : > { %2490 = vmatmul.mubr.msk.f32.vlgmr.msra.gmra.mrb[14].mxu0 %vm265_vm1, %v2755_v9  ;;  %2493 = vmatmul.mubr.msk.f32.vlgmr.msra.gmra.mrb[14].mxu1 %vm265_vm1, %v2755_v9 }
  0x90   : > { %v2847_v36 = vpop.permute.xlu0 %230 }
  0xeb   : > { %v400_v37 = vpop.f32.mrb[0].mxu0  ;;  %v471_v38 = vpop.f32.mrb[0].mxu1 }
  0xec   : > { %v2850_v39 = vadd.f32 %v400_v37, %v2847_v36  ;;  %v2853_v40 = vadd.f32 %v471_v38, %v2847_v36  ;;  %v402_v41 = vpop.f32.mrb[1].mxu0  ;;  %v473_v42 = vpop.f32.mrb[1].mxu1 }
  0xed   : > { %v2856_v43 = vadd.f32 %v402_v41, %v2847_v36  ;;  %v2859_v44 = vadd.f32 %v473_v42, %v2847_v36 }
  0xee   : > { %v1470_v45 = vsel %vm269_vm0, %v2850_v39, -inf  ;;  %v1484_v46 = vsel %vm269_vm0, %v2853_v40, -inf }
  0xef   : > { %v1471_v47 = vrot.slane %v1470_v45, 4  ;;  %v1485_v48 = vrot.slane %v1484_v46, 4  ;;  %v1477_v49 = vsel %vm269_vm0, %v2856_v43, -inf  ;;  %v1491_v50 = vsel %vm269_vm0, %v2859_v44, -inf  ;;  %v542_v51 = vpop.f32.mrb[2].mxu0  ;;  %v613_v52 = vpop.f32.mrb[2].mxu1 }
  0xf0   : > { %v1478_v53 = vrot.slane %v1477_v49, 4  ;;  %v1492_v54 = vrot.slane %v1491_v50, 4  ;;  %v2870_v55 = vadd.f32 %v542_v51, %v2847_v36  ;;  %v2873_v56 = vadd.f32 %v613_v52, %v2847_v36  ;;  %v544_v57 = vpop.f32.mrb[3].mxu0  ;;  %v615_v58 = vpop.f32.mrb[3].mxu1 }
  0xf1   : > { %v1472_v59 = vmax.f32 %v1470_v45, %v1471_v47  ;;  %v1486_v60 = vmax.f32 %v1484_v46, %v1485_v48  ;;  %v2876_v61 = vadd.f32 %v544_v57, %v2847_v36  ;;  %v2879_v62 = vadd.f32 %v615_v58, %v2847_v36 }
  0xf2   : > { %v1479_v63 = vmax.f32 %v1477_v49, %v1478_v53  ;;  %v1493_v0 = vmax.f32 %v1491_v50, %v1492_v54  ;;  %v1498_v1 = vsel %vm269_vm0, %v2870_v55, -inf  ;;  %v1512_v2 = vsel %vm269_vm0, %v2873_v56, -inf }
  0xf3   : > { %v1473_v3 = vrot.slane %v1472_v59, 2  ;;  %v1487_v4 = vrot.slane %v1486_v60, 2  ;;  %v1499_v5 = vrot.slane %v1498_v1, 4  ;;  %v1513_v6 = vrot.slane %v1512_v2, 4  ;;  %v684_v7 = vpop.f32.mrb[4].mxu0  ;;  %v2885_v8 = vpop.f32.mrb[4].mxu1 }
  0xf4   : > { %v1480_v9 = vrot.slane %v1479_v63, 2  ;;  %v1494_v10 = vrot.slane %v1493_v0, 2  ;;  %v1505_v11 = vsel %vm269_vm0, %v2876_v61, -inf  ;;  %v1519_v12 = vsel %vm269_vm0, %v2879_v62, -inf  ;;  %v2891_v13 = vpop.f32.mrb[5].mxu0  ;;  %v2893_v14 = vpop.f32.mrb[5].mxu1 }
  0xf5   : > { %v1474_v15 = vmax.f32 %v1472_v59, %v1473_v3  ;;  %v1488_v16 = vmax.f32 %v1486_v60, %v1487_v4  ;;  %v1500_v17 = vmax.f32 %v1498_v1, %v1499_v5  ;;  %v1514_v18 = vmax.f32 %v1512_v2, %v1513_v6 }
  0xf6   : > { %v1481_v19 = vmax.f32 %v1479_v63, %v1480_v9  ;;  %v1495_v20 = vmax.f32 %v1493_v0, %v1494_v10  ;;  %v1506_v21 = vrot.slane %v1505_v11, 4  ;;  %v1520_v22 = vrot.slane %v1519_v12, 4 }
  0xf7   : > { %v1475_v23 = vrot.slane %v1474_v15, 1  ;;  %v1489_v24 = vrot.slane %v1488_v16, 1  ;;  %v1501_v25 = vrot.slane %v1500_v17, 2  ;;  %v1515_v26 = vrot.slane %v1514_v18, 2  ;;  %v2895_v27 = vpop.f32.mrb[6].mxu0  ;;  %v2897_v28 = vpop.f32.mrb[6].mxu1 }
  0xf8   : > { %v1482_v29 = vrot.slane %v1481_v19, 1  ;;  %v1496_v30 = vrot.slane %v1495_v20, 1  ;;  %v1507_v31 = vmax.f32 %v1505_v11, %v1506_v21  ;;  %v1521_v32 = vmax.f32 %v1519_v12, %v1520_v22  ;;  %v2899_v33 = vpop.f32.mrb[7].mxu0  ;;  %v2901_v34 = vpop.f32.mrb[7].mxu1 }
  0xf9   : > { %v1476_v35 = vmax.f32 %v1474_v15, %v1475_v23  ;;  %v1490_v37 = vmax.f32 %v1488_v16, %v1489_v24  ;;  %v1502_v38 = vmax.f32 %v1500_v17, %v1501_v25  ;;  %v1516_v41 = vmax.f32 %v1514_v18, %v1515_v26 }
  0xfa   : > { %v1483_v42 = vmax.f32 %v1481_v19, %v1482_v29  ;;  %v1497_v45 = vmax.f32 %v1495_v20, %v1496_v30  ;;  %v1508_v46 = vrot.slane %v1507_v31, 2  ;;  %v1522_v47 = vrot.slane %v1521_v32, 2 }
  0xfb   : > { %v1694_v48 = vsub.f32 %v2850_v39, %v1476_v35  ;;  %v1696_v49 = vsub.f32 %v2853_v40, %v1490_v37  ;;  %v1503_v50 = vrot.slane %v1502_v38, 1  ;;  %v1517_v51 = vrot.slane %v1516_v41, 1  ;;  %v2905_v52 = vpop.f32.mrb[8].mxu0  ;;  %v2907_v53 = vpop.f32.mrb[8].mxu1 }
  0xfc   : > { %v1695_v54 = vsub.f32 %v2856_v43, %v1483_v42  ;;  %v1697_v57 = vsub.f32 %v2859_v44, %v1497_v45  ;;  %v1509_v58 = vmax.f32 %v1507_v31, %v1508_v46  ;;  %v1523_v59 = vmax.f32 %v1521_v32, %v1522_v47  ;;  %v2911_v60 = vpop.f32.mrb[9].mxu0  ;;  %v2913_v63 = vpop.f32.mrb[9].mxu1 }
  0xfd   : > { %v1726_v0 = vmul.f32 1.442695, %v1694_v48  ;;  %v1730_v39 = vmul.f32 1.442695, %v1696_v49  ;;  %v1504_v1 = vmax.f32 %v1502_v38, %v1503_v50  ;;  %v1518_v40 = vmax.f32 %v1516_v41, %v1517_v51 }
  0xfe   : > { %v1728_v2 = vmul.f32 1.442695, %v1695_v54  ;;  %v1732_v3 = vmul.f32 1.442695, %v1697_v57  ;;  %v1510_v4 = vrot.slane %v1509_v58, 1  ;;  %v1524_v5 = vrot.slane %v1523_v59, 1 }
  0xff   : > { %2541 = vpow2.f32 %v1726_v0  ;;  %v1698_v6 = vsub.f32 %v2870_v55, %v1504_v1  ;;  %v1700_v43 = vsub.f32 %v2873_v56, %v1518_v40  ;;  %v2918_v44 = vadd.f32 %v684_v7, %v2847_v36  ;;  %v2920_v9 = vpop.f32.mrb[10].mxu0  ;;  %v2922_v10 = vpop.f32.mrb[10].mxu1 }
 0x100   : > { %2543 = vpow2.f32 %v1730_v39  ;;  %v1511_v11 = vmax.f32 %v1509_v58, %v1510_v4  ;;  %v1525_v12 = vmax.f32 %v1523_v59, %v1524_v5  ;;  %v2926_v15 = vadd.f32 %v2885_v8, %v2847_v36  ;;  %v2928_v16 = vpop.f32.mrb[11].mxu0  ;;  %v2930_v17 = vpop.f32.mrb[11].mxu1 }
 0x101   : > { %2545 = vpow2.f32 %v1728_v2  ;;  %v1734_v55 = vmul.f32 1.442695, %v1698_v6  ;;  %v1738_v56 = vmul.f32 1.442695, %v1700_v43  ;;  %v1526_v7 = vsel %vm269_vm0, %v2918_v44, -inf }
 0x102   : > { %2547 = vpow2.f32 %v1732_v3  ;;  %v1699_v18 = vsub.f32 %v2876_v61, %v1511_v11  ;;  %v1701_v19 = vsub.f32 %v2879_v62, %v1525_v12  ;;  %v1527_v20 = vrot.slane %v1526_v7, 4 }
 0x103   : > { %2549 = vpow2.f32 %v1734_v55  ;;  %v1540_v8 = vsel %vm269_vm0, %v2926_v15, -inf  ;;  %v2940_v21 = vadd.f32 %v2891_v13, %v2847_v36  ;;  %v2944_v22 = vadd.f32 %v2893_v14, %v2847_v36  ;;  %v2946_v23 = vpop.f32.mrb[12].mxu0  ;;  %v2948_v24 = vpop.f32.mrb[12].mxu1 }
 0x104   : > { %2551 = vpow2.f32 %v1738_v56  ;;  %v1736_v61 = vmul.f32 1.442695, %v1699_v18  ;;  %v1740_v62 = vmul.f32 1.442695, %v1701_v19  ;;  %v1528_v25 = vmax.f32 %v1526_v7, %v1527_v20  ;;  %v2950_v26 = vpop.f32.mrb[13].mxu0  ;;  %v2952_v29 = vpop.f32.mrb[13].mxu1 }
 0x105   : > { %3497 = vst [vmem:[#allocation2_spill] sm:$0xff] %v2952_v29  ;;  %v1541_v30 = vrot.slane %v1540_v8, 4  ;;  %v1533_v13 = vsel %vm269_vm0, %v2940_v21, -inf  ;;  %v1547_v14 = vsel %vm269_vm0, %v2944_v22, -inf  ;;  %v2960_v31 = vadd.f32 %v2895_v27, %v2847_v36 }
 0x106   : > { %2553 = vpow2.f32 %v1736_v61  ;;  %v1529_v32 = vrot.slane %v1528_v25, 2  ;;  %v1534_v35 = vrot.slane %v1533_v13, 4  ;;  %v1548_v37 = vrot.slane %v1547_v14, 4 }
 0x107   : > { %2555 = vpow2.f32 %v1740_v62  ;;  %v1542_v38 = vmax.f32 %v1540_v8, %v1541_v30  ;;  %v1554_v41 = vsel %vm269_vm0, %v2960_v31, -inf  ;;  %v2966_v42 = vadd.f32 %v2897_v28, %v2847_v36  ;;  %v2968_v45 = vpop.f32.mrb[14].mxu0  ;;  %v2972_v49 = vpop.f32.mrb[14].mxu1 }
 0x108   : > { %3498 = vst [vmem:[#allocation3_spill] sm:$0xff] %v2968_v45  ;;  %v1530_v46 = vmax.f32 %v1528_v25, %v1529_v32  ;;  %v1535_v47 = vmax.f32 %v1533_v13, %v1534_v35  ;;  %v2970_v48 = vmax.f32 %v1547_v14, %v1548_v37  ;;  %v1555_v27 = vrot.slane %v1554_v41, 4  ;;  %3499 = vst [vmem:[#allocation4_spill] sm:$0xff] %v2972_v49 }
 0x109   : > { %v2974_v50 = vpop.eup %2541  ;;  %v1543_v51 = vrot.slane %v1542_v38, 2  ;;  %v2978_v54 = vsel %vm269_vm0, %v2966_v42, -inf  ;;  %v2982_v28 = vadd.f32 %v2899_v33, %v2847_v36  ;;  %v2986_v57 = vadd.f32 %v2901_v34, %v2847_v36 }
 0x10a   : > { %v2988_v58 = vpop.eup %2543  ;;  %v1790_v59 = vsel %vm269_vm0, %v2974_v50, 0.0  ;;  %v1531_v0 = vrot.slane %v1530_v46, 1  ;;  %v1536_v39 = vrot.slane %v1535_v47, 2  ;;  %v2999_v4 = vmax.f32 %v1554_v41, %v1555_v27 }
 0x10b   : > { %v2993_v40 = vpop.eup %2545  ;;  %v1791_v2 = vrot.slane %v1790_v59, 4  ;;  %v1804_v33 = vsel %vm269_vm0, %v2988_v58, 0.0  ;;  %v2997_v3 = vmax.f32 %v1542_v38, %v1543_v51 }
 0x10c   : > { %v3001_v34 = vpop.eup %2547  ;;  %v1805_v5 = vrot.slane %v1804_v33, 4  ;;  %v1797_v6 = vsel %vm269_vm0, %v2993_v40, 0.0  ;;  %v1532_v43 = vmax.f32 %v1530_v46, %v1531_v0  ;;  %v3005_v11 = vmax.f32 %v1535_v47, %v1536_v39 }
 0x10d   : > { %v3007_v12 = vpop.eup %2549  ;;  %v1792_v55 = vadd.f32 %v1791_v2, %v1790_v59  ;;  %v1798_v56 = vrot.slane %v1797_v6, 4  ;;  %v1811_v7 = vsel %vm269_vm0, %v3001_v34, 0.0  ;;  %v1545_v18 = vrot.slane %v2997_v3, 1 }
 0x10e   : > { %v3012_v19 = vpop.eup %2551  ;;  %v1806_v20 = vadd.f32 %v1805_v5, %v1804_v33  ;;  %v1812_v8 = vrot.slane %v1811_v7, 4  ;;  %v1818_v61 = vsel %vm269_vm0, %v3007_v12, 0.0  ;;  %v1702_v62 = vsub.f32 %v2918_v44, %v1532_v43 }
 0x10f   : > { %v1793_v25 = vrot.slane %v1792_v55, 2  ;;  %v1799_v30 = vadd.f32 %v1798_v56, %v1797_v6  ;;  %v1819_v13 = vrot.slane %v1818_v61, 4  ;;  %v1832_v14 = vsel %vm269_vm0, %v3012_v19, 0.0  ;;  %v3027_v56 = vpop.f32.mrb[15].mxu0 }
 0x110   : > { %v3019_v32 = vpop.eup %2553  ;;  %v1807_v35 = vrot.slane %v1806_v20, 2  ;;  %v1813_v37 = vadd.f32 %v1812_v8, %v1811_v7  ;;  %v1833_v38 = vrot.slane %v1832_v14, 4  ;;  %v1742_v41 = vmul.f32 1.442695, %v1702_v62  ;;  %3500 = vst [vmem:[#allocation5_spill] sm:$0xff] %v3027_v56 }
 0x111   : > { %v3021_v46 = vpop.eup %2555  ;;  %v1794_v47 = vadd.f32 %v1793_v25, %v1792_v55  ;;  %v1800_v27 = vrot.slane %v1799_v30, 2  ;;  %v1820_v51 = vadd.f32 %v1819_v13, %v1818_v61  ;;  %v1825_v44 = vsel %vm269_vm0, %v3019_v32, 0.0 }
 0x112   : > { %v1808_v59 = vadd.f32 %v1807_v35, %v1806_v20  ;;  %v1814_v0 = vrot.slane %v1813_v37, 2  ;;  %v1834_v39 = vadd.f32 %v1833_v38, %v1832_v14  ;;  %v1826_v2 = vrot.slane %v1825_v44, 4 }
 0x113   : > { %v1795_v33 = vrot.slane %v1794_v47, 1  ;;  %v1801_v5 = vadd.f32 %v1800_v27, %v1799_v30  ;;  %v1821_v6 = vrot.slane %v1820_v51, 2  ;;  %v1839_v43 = vsel %vm269_vm0, %v3021_v46, 0.0  ;;  %v3033_v27 = vpop.f32.mrb[15].mxu1 }
 0x114   : > { %v1809_v7 = vrot.slane %v1808_v59, 1  ;;  %v1815_v8 = vadd.f32 %v1814_v0, %v1813_v37  ;;  %v1835_v55 = vrot.slane %v1834_v39, 2  ;;  %v1827_v62 = vadd.f32 %v1826_v2, %v1825_v44  ;;  %3501 = vst [vmem:[#allocation6_spill] sm:$0xff] %v3033_v27 }
 0x115   : > { %v3029_v61 = vadd.f32 %v1795_v33, %v1794_v47  ;;  %v1802_v25 = vrot.slane %v1801_v5, 1  ;;  %v1822_v13 = vadd.f32 %v1821_v6, %v1820_v51  ;;  %v1840_v20 = vrot.slane %v1839_v43, 4 }
 0x116   : > { %v3031_v35 = vadd.f32 %v1809_v7, %v1808_v59  ;;  %v1816_v14 = vrot.slane %v1815_v8, 1  ;;  %v1836_v38 = vadd.f32 %v1835_v55, %v1834_v39  ;;  %v1828_v30 = vrot.slane %v1827_v62, 2 }
 0x117   : > { %2557 = vrcp.f32 %v3029_v61  ;;  %v3036_v1 = vadd.f32 %v1802_v25, %v1801_v5  ;;  %v1823_v56 = vrot.slane %v1822_v13, 1  ;;  %v1841_v37 = vadd.f32 %v1840_v20, %v1839_v43 }
 0x118   : > { %2559 = vrcp.f32 %v3031_v35  ;;  %v3039_v47 = vadd.f32 %v1816_v14, %v1815_v8  ;;  %v1837_v44 = vrot.slane %v1836_v38, 1  ;;  %v1829_v51 = vadd.f32 %v1828_v30, %v1827_v62 }
 0x119   : > { %2561 = vrcp.f32 %v3036_v1  ;;  %v3042_v59 = vadd.f32 %v1823_v56, %v1822_v13  ;;  %v1842_v0 = vrot.slane %v1841_v37, 2  ;;  %v1546_v39 = vmax.f32 %v2997_v3, %v1545_v18 }
 0x11a   : > { %2563 = vrcp.f32 %v3039_v47  ;;  %v3046_v2 = vadd.f32 %v1837_v44, %v1836_v38  ;;  %v1830_v33 = vrot.slane %v1829_v51, 1  ;;  %v1538_v5 = vrot.slane %v3005_v11, 1 }
 0x11b   : > { %2565 = vrcp.f32 %v3042_v59  ;;  %v1843_v6 = vadd.f32 %v1842_v0, %v1841_v37  ;;  %v1704_v43 = vsub.f32 %v2926_v15, %v1546_v39  ;;  %v3502_v7 = vrot.slane %v2970_v48, 2 }
 0x11c   : > { %2567 = vrcp.f32 %v3046_v2  ;;  %v3055_v8 = vadd.f32 %v1830_v33, %v1829_v51  ;;  %v1539_v3 = vmax.f32 %v3005_v11, %v1538_v5  ;;  %v1557_v18 = vrot.slane %v2999_v4, 2 }
 0x11d   : > { %v1551_v56 = vmax.f32 %v2970_v48, %v3502_v7  ;;  %v1844_v55 = vrot.slane %v1843_v6, 1  ;;  %2569 = vpow2.f32 %v1742_v41  ;;  %v1746_v62 = vmul.f32 1.442695, %v1704_v43 }
 0x11e   : > { %2571 = vrcp.f32 %v3055_v8  ;;  %v1703_v15 = vsub.f32 %v2940_v21, %v1539_v3  ;;  %v1558_v13 = vmax.f32 %v2999_v4, %v1557_v18  ;;  %v1569_v48 = vrot.slane %v2978_v54, 4 }
 0x11f   : > { %v1552_v25 = vrot.slane %v1551_v56, 1  ;;  %v3063_v20 = vadd.f32 %v1844_v55, %v1843_v6  ;;  %2573 = vpow2.f32 %v1746_v62  ;;  %v1561_v11 = vsel %vm269_vm0, %v2982_v28, -inf }
 0x120   : > { %v1744_v38 = vmul.f32 1.442695, %v1703_v15  ;;  %v1559_v30 = vrot.slane %v1558_v13, 1  ;;  %v1570_v41 = vmax.f32 %v2978_v54, %v1569_v48  ;;  %v1562_v37 = vrot.slane %v1561_v11, 4 }
 0x121   : > { %v1553_v14 = vmax.f32 %v1551_v56, %v1552_v25  ;;  %v2558_v44 = vpop.eup %2557  ;;  %2575 = vrcp.f32 %v3063_v20  ;;  %v3072_v4 = vsel %vm269_vm0, %v2986_v57, -inf  ;;  %v3076_v51 = vadd.f32 %v2905_v52, %v2847_v36 }
 0x122   : > { %v2560_v0 = vpop.eup %2559  ;;  %v2046_v39 = vmul.f32 %v2558_v44, %v3029_v61  ;;  %2577 = vpow2.f32 %v1744_v38  ;;  %v1560_v33 = vmax.f32 %v1558_v13, %v1559_v30  ;;  %v1571_v54 = vrot.slane %v1570_v41, 2 }
 0x123   : > { %v1705_v21 = vsub.f32 %v2944_v22, %v1553_v14  ;;  %v2562_v5 = vpop.eup %2561  ;;  %v2048_v6 = vmul.f32 %v2560_v0, %v3031_v35  ;;  %v3080_v7 = vmax.f32 %v1561_v11, %v1562_v37 }
 0x124   : > { %v2564_v56 = vpop.eup %2563  ;;  %v2078_v3 = vsub.f32 2.0, %v2046_v39  ;;  %v2047_v18 = vmul.f32 %v2562_v5, %v3036_v1  ;;  %v1706_v52 = vsub.f32 %v2960_v31, %v1560_v33  ;;  %v3085_v55 = vmax.f32 %v1570_v41, %v1571_v54 }
 0x125   : > { %v1748_v43 = vmul.f32 1.442695, %v1705_v21  ;;  %v2566_v62 = vpop.eup %2565  ;;  %v2080_v25 = vsub.f32 2.0, %v2048_v6  ;;  %v2049_v15 = vmul.f32 %v2564_v56, %v3039_v47 }
 0x126   : > { %v2568_v48 = vpop.eup %2567  ;;  %v2110_v14 = vmul.f32 %v2558_v44, %v2078_v3  ;;  %v2079_v11 = vsub.f32 2.0, %v2047_v18  ;;  %v2050_v38 = vmul.f32 %v2566_v62, %v3042_v59  ;;  %v3090_v30 = vmul.f32 1.442695, %v1706_v52 }
 0x127   : > { %2579 = vpow2.f32 %v1748_v43  ;;  %v3092_v37 = vpop.eup %2569  ;;  %v2112_v21 = vmul.f32 %v2560_v0, %v2080_v25  ;;  %v2081_v31 = vsub.f32 2.0, %v2049_v15  ;;  %v2052_v41 = vmul.f32 %v2568_v48, %v3046_v2 }
 0x128   : > { %v2572_v33 = vpop.eup %2571  ;;  %v2142_v54 = vmul.f32 %v2110_v14, %v3029_v61  ;;  %v2111_v6 = vmul.f32 %v2562_v5, %v2079_v11  ;;  %v2082_v43 = vsub.f32 2.0, %v2050_v38  ;;  %v1846_v44 = vsel %vm269_vm0, %v3092_v37, 0.0 }
 0x129   : > { %v3099_v3 = vpop.eup %2573  ;;  %v2144_v18 = vmul.f32 %v2112_v21, %v3031_v35  ;;  %v2113_v52 = vmul.f32 %v2564_v56, %v2081_v31  ;;  %v2084_v22 = vsub.f32 2.0, %v2052_v41  ;;  %v2051_v0 = vmul.f32 %v2572_v33, %v3055_v8 }
 0x12a   : > { %v2174_v25 = vsub.f32 2.0, %v2142_v54  ;;  %v2143_v15 = vmul.f32 %v2111_v6, %v3036_v1  ;;  %v2114_v13 = vmul.f32 %v2566_v62, %v2082_v43  ;;  %v1847_v39 = vrot.slane %v1846_v44, 4 }
 0x12b   : > { %v2576_v27 = vpop.eup %2575  ;;  %v2176_v61 = vsub.f32 2.0, %v2144_v18  ;;  %v2145_v5 = vmul.f32 %v2113_v52, %v3039_v47  ;;  %v2116_v11 = vmul.f32 %v2568_v48, %v2084_v22  ;;  %v2083_v38 = vsub.f32 2.0, %v2051_v0 }
 0x12c   : > { %v3105_v49 = vpop.eup %2577  ;;  %v2206_v45 = vmul.f32 %v2174_v25, %v2110_v14  ;;  %v2175_v29 = vsub.f32 2.0, %v2143_v15  ;;  %v2146_v35 = vmul.f32 %v2114_v13, %v3042_v59  ;;  %v2053_v56 = vmul.f32 %v2576_v27, %v3063_v20 }
 0x12d   : > { %v2208_v31 = vmul.f32 %v2176_v61, %v2112_v21  ;;  %v2177_v41 = vsub.f32 2.0, %v2145_v5  ;;  %v2148_v1 = vmul.f32 %v2116_v11, %v3046_v2  ;;  %v2115_v62 = vmul.f32 %v2572_v33, %v2083_v38 }
 0x12e   : > { %v2238_v54 = vmul.f32 %v2974_v50, %v2206_v45  ;;  %v2207_v43 = vmul.f32 %v2175_v29, %v2111_v6  ;;  %v2178_v47 = vsub.f32 2.0, %v2146_v35  ;;  %v2085_v22 = vsub.f32 2.0, %v2053_v56 }
 0x12f   : > { %v2240_v14 = vmul.f32 %v2988_v58, %v2208_v31  ;;  %v2209_v18 = vmul.f32 %v2177_v41, %v2113_v52  ;;  %v2180_v0 = vsub.f32 2.0, %v2148_v1  ;;  %v2147_v59 = vmul.f32 %v2115_v62, %v3055_v8 }
 0x130   : > { %v2239_v21 = vmul.f32 %v2993_v40, %v2207_v43  ;;  %v2210_v25 = vmul.f32 %v2178_v47, %v2114_v13  ;;  %v2117_v15 = vmul.f32 %v2576_v27, %v2085_v22  ;;  %v1848_v61 = vadd.f32 %v1847_v39, %v1846_v44 }
 0x131   : > { %v3111_v48 = vpop.eup %2579  ;;  %v2241_v29 = vmul.f32 %v3001_v34, %v2209_v18  ;;  %v2212_v45 = vmul.f32 %v2180_v0, %v2116_v11  ;;  %v2179_v50 = vsub.f32 2.0, %v2147_v59  ;;  %v1860_v58 = vsel %vm269_vm0, %v3099_v3, 0.0 }
 0x132   : > { %v2302_v2 = vcombine.low %v2238_v54, %v2239_v21  ;;  %v2242_v40 = vmul.f32 %v3007_v12, %v2210_v25  ;;  %v2149_v27 = vmul.f32 %v2117_v15, %v3063_v20  ;;  %v1849_v8 = vrot.slane %v1848_v61, 2 }
 0x133   : > { %v2303_v13 = vcombine.low %v2240_v14, %v2241_v29  ;;  %v2244_v39 = vmul.f32 %v3012_v19, %v2212_v45  ;;  %v2211_v33 = vmul.f32 %v2179_v50, %v2115_v62  ;;  %v1861_v6 = vrot.slane %v1860_v58, 4 }
 0x134   : > { %2334 = vst [vmem:[%s3121_s26] sm:$0xff] %v2302_v2  ;;  %v2181_v44 = vsub.f32 2.0, %v2149_v27  ;;  %v1850_v34 = vadd.f32 %v1849_v8, %v1848_v61  ;;  %v1853_v52 = vsel %vm269_vm0, %v3105_v49, 0.0  ;;  %v1867_v5 = vsel %vm269_vm0, %v3111_v48, 0.0 }
 0x135   : > { %2335 = vst [vmem:[%s3121_s26 + $0x8] sm:$0xff] %v2303_v13  ;;  %v2243_v12 = vmul.f32 %v3019_v32, %v2211_v33  ;;  %v1862_v20 = vadd.f32 %v1861_v6, %v1860_v58  ;;  %v1854_v11 = vrot.slane %v1853_v52, 4  ;;  %v1868_v38 = vrot.slane %v1867_v5, 4 }
 0x136   : > { %v2213_v35 = vmul.f32 %v2181_v44, %v2117_v15  ;;  %v1851_v19 = vrot.slane %v1850_v34, 1  ;;  %2581 = vpow2.f32 %v3090_v30  ;;  %v3503_v56 = vrot.slane %v3085_v55, 1 }
 0x137   : > { %v2304_v41 = vcombine.low %v2242_v40, %v2243_v12  ;;  %v1863_v1 = vrot.slane %v1862_v20, 2  ;;  %v1855_v62 = vadd.f32 %v1854_v11, %v1853_v52  ;;  %v1869_v54 = vadd.f32 %v1868_v38, %v1867_v5 }
 0x138   : > { %v1574_v31 = vmax.f32 %v3085_v55, %v3503_v56  ;;  %v2245_v43 = vmul.f32 %v3021_v46, %v2213_v35  ;;  %v3141_v47 = vadd.f32 %v1851_v19, %v1850_v34  ;;  %v3504_v22 = vrot.slane %v3080_v7, 2 }
 0x139   : > { %2336 = vst [vmem:[%s3121_s26 + $0x10] sm:$0xff] %v2304_v41  ;;  %v1864_v30 = vadd.f32 %v1863_v1, %v1862_v20  ;;  %v1856_v18 = vrot.slane %v1855_v62, 2  ;;  %v1870_v0 = vrot.slane %v1869_v54, 2  ;;  %v3505_v55 = vrot.slane %v3072_v4, 4 }
 0x13a   : > { %v1708_v32 = vsub.f32 %v2966_v42, %v1574_v31  ;;  %v1565_v14 = vmax.f32 %v3080_v7, %v3504_v22  ;;  %v2305_v21 = vcombine.low %v2244_v39, %v2245_v43  ;;  %2583 = vrcp.f32 %v3141_v47 }
 0x13b   : > { %v1577_v59 = vmax.f32 %v3072_v4, %v3505_v55  ;;  %v1865_v15 = vrot.slane %v1864_v30, 1  ;;  %v1857_v61 = vadd.f32 %v1856_v18, %v1855_v62  ;;  %v1871_v42 = vadd.f32 %v1870_v0, %v1869_v54 }
 0x13c   : > { %v1754_v46 = vmul.f32 1.442695, %v1708_v32  ;;  %v1566_v25 = vrot.slane %v1565_v14, 1  ;;  %2337 = vst [vmem:[%s3121_s26 + $0x18] sm:$0xff] %v2305_v21  ;;  %v1582_v45 = vsel %vm269_vm0, %v3076_v51, -inf  ;;  %v3157_v50 = vadd.f32 %v2907_v53, %v2847_v36 }
 0x13d   : > { %v1578_v29 = vrot.slane %v1577_v59, 2  ;;  %v3159_v4 = vadd.f32 %v1865_v15, %v1864_v30  ;;  %v1858_v58 = vrot.slane %v1857_v61, 1  ;;  %v1872_v2 = vrot.slane %v1871_v42, 1 }
 0x13e   : > { %2585 = vpow2.f32 %v1754_v46  ;;  %v1567_v7 = vmax.f32 %v1565_v14, %v1566_v25  ;;  %v1583_v8 = vrot.slane %v1582_v45, 4  ;;  %v1596_v13 = vsel %vm269_vm0, %v3157_v50, -inf }
 0x13f   : > { %v1579_v40 = vmax.f32 %v1577_v59, %v1578_v29  ;;  %v3166_v39 = vadd.f32 %v2911_v60, %v2847_v36  ;;  %2587 = vrcp.f32 %v3159_v4  ;;  %v3169_v33 = vadd.f32 %v1858_v58, %v1857_v61 }
 0x140   : > { %v1707_v27 = vsub.f32 %v2982_v28, %v1567_v7  ;;  %v3171_v53 = vadd.f32 %v1872_v2, %v1871_v42  ;;  %v3173_v44 = vpop.eup %2581  ;;  %v1584_v52 = vmax.f32 %v1582_v45, %v1583_v8  ;;  %v1597_v28 = vrot.slane %v1596_v13, 4 }
 0x141   : > { %v1580_v6 = vrot.slane %v1579_v40, 1  ;;  %v1589_v5 = vsel %vm269_vm0, %v3166_v39, -inf  ;;  %2589 = vrcp.f32 %v3169_v33  ;;  %v1874_v60 = vsel %vm269_vm0, %v3173_v44, 0.0 }
 0x142   : > { %v1752_v34 = vmul.f32 1.442695, %v1707_v27  ;;  %v1590_v20 = vrot.slane %v1589_v5, 4  ;;  %2591 = vrcp.f32 %v3171_v53  ;;  %v1875_v11 = vrot.slane %v1874_v60, 4 }
 0x143   : > { %v1581_v12 = vmax.f32 %v1579_v40, %v1580_v6  ;;  %v1585_v38 = vrot.slane %v1584_v52, 2  ;;  %v1598_v35 = vmax.f32 %v1596_v13, %v1597_v28  ;;  %v3184_v31 = vadd.f32 %v2913_v63, %v2847_v36 }
 0x144   : > { %2593 = vpow2.f32 %v1752_v34  ;;  %v1591_v56 = vmax.f32 %v1589_v5, %v1590_v20  ;;  %v2584_v41 = vpop.eup %2583  ;;  %v1876_v1 = vadd.f32 %v1875_v11, %v1874_v60  ;;  %v3188_v43 = vadd.f32 %v2920_v9, %v2847_v36 }
 0x145   : > { %v1709_v19 = vsub.f32 %v2986_v57, %v1581_v12  ;;  %v1586_v62 = vmax.f32 %v1584_v52, %v1585_v38  ;;  %v1599_v54 = vrot.slane %v1598_v35, 2  ;;  %v2054_v32 = vmul.f32 %v2584_v41, %v3141_v47 }
 0x146   : > { %v1592_v14 = vrot.slane %v1591_v56, 2  ;;  %v1603_v57 = vsel %vm269_vm0, %v3184_v31, -inf  ;;  %v1877_v18 = vrot.slane %v1876_v1, 2  ;;  %v3199_v58 = vsel %vm269_vm0, %v3188_v43, -inf }
 0x147   : > { %v1756_v22 = vmul.f32 1.442695, %v1709_v19  ;;  %v1587_v63 = vrot.slane %v1586_v62, 1  ;;  %v1600_v0 = vmax.f32 %v1598_v35, %v1599_v54  ;;  %v1604_v55 = vrot.slane %v1603_v57, 4 }
 0x148   : > { %v3193_v30 = vpop.eup %2585  ;;  %v2086_v59 = vsub.f32 2.0, %v2054_v32  ;;  %v1593_v9 = vmax.f32 %v1591_v56, %v1592_v14  ;;  %v1878_v46 = vadd.f32 %v1877_v18, %v1876_v1 }
 0x149   : > { %v1888_v21 = vsel %vm269_vm0, %v3193_v30, 0.0  ;;  %2595 = vpow2.f32 %v1756_v22  ;;  %v1588_v15 = vmax.f32 %v1586_v62, %v1587_v63  ;;  %v1601_v61 = vrot.slane %v1600_v0, 1  ;;  %v2588_v42 = vpop.eup %2587 }
 0x14a   : > { %v1889_v25 = vrot.slane %v1888_v21, 4  ;;  %v2118_v29 = vmul.f32 %v2584_v41, %v2086_v59  ;;  %v1594_v7 = vrot.slane %v1593_v9, 1  ;;  %v1605_v45 = vmax.f32 %v1603_v57, %v1604_v55 }
 0x14b   : > { %v2056_v2 = vmul.f32 %v2588_v42, %v3159_v4  ;;  %v1879_v40 = vrot.slane %v1878_v46, 1  ;;  %v1710_v8 = vsub.f32 %v3076_v51, %v1588_v15  ;;  %v2590_v13 = vpop.eup %2589  ;;  %v1602_v34 = vmax.f32 %v1600_v0, %v1601_v61 }
 0x14c   : > { %v1890_v27 = vadd.f32 %v1889_v25, %v1888_v21  ;;  %v2150_v6 = vmul.f32 %v2118_v29, %v3141_v47  ;;  %v1595_v52 = vmax.f32 %v1593_v9, %v1594_v7  ;;  %v1606_v28 = vrot.slane %v1605_v45, 2  ;;  %v2592_v5 = vpop.eup %2591 }
 0x14d   : > { %v2088_v60 = vsub.f32 2.0, %v2056_v2  ;;  %v2055_v12 = vmul.f32 %v2590_v13, %v3169_v33  ;;  %v3205_v20 = vadd.f32 %v1879_v40, %v1878_v46  ;;  %v2057_v19 = vmul.f32 %v2592_v5, %v3171_v53 }
 0x14e   : > { %v1891_v11 = vrot.slane %v1890_v27, 2  ;;  %v3207_v38 = vpop.eup %2593  ;;  %v2182_v35 = vsub.f32 2.0, %v2150_v6  ;;  %v1758_v56 = vmul.f32 1.442695, %v1710_v8  ;;  %v1712_v51 = vsub.f32 %v3157_v50, %v1602_v34 }
 0x14f   : > { %v2120_v41 = vmul.f32 %v2588_v42, %v2088_v60  ;;  %v2087_v47 = vsub.f32 2.0, %v2055_v12  ;;  %2597 = vrcp.f32 %v3205_v20  ;;  %v2089_v54 = vsub.f32 2.0, %v2057_v19 }
 0x150   : > { %v1892_v1 = vadd.f32 %v1891_v11, %v1890_v27  ;;  %v2214_v62 = vmul.f32 %v2182_v35, %v2118_v29  ;;  %v1881_v32 = vsel %vm269_vm0, %v3207_v38, 0.0  ;;  %2599 = vpow2.f32 %v1758_v56 }
 0x151   : > { %v2152_v22 = vmul.f32 %v2120_v41, %v3159_v4  ;;  %v2119_v14 = vmul.f32 %v2590_v13, %v2087_v47  ;;  %v1882_v18 = vrot.slane %v1881_v32, 4  ;;  %v2121_v0 = vmul.f32 %v2592_v5, %v2089_v54 }
 0x152   : > { %v1893_v57 = vrot.slane %v1892_v1, 1  ;;  %v2246_v50 = vmul.f32 %v3092_v37, %v2214_v62  ;;  %v1762_v55 = vmul.f32 1.442695, %v1712_v51  ;;  %v1711_v59 = vsub.f32 %v3166_v39, %v1595_v52 }
 0x153   : > { %v3215_v63 = vpop.eup %2595  ;;  %v2184_v21 = vsub.f32 2.0, %v2152_v22  ;;  %v2151_v9 = vmul.f32 %v2119_v14, %v3169_v33  ;;  %v1883_v25 = vadd.f32 %v1882_v18, %v1881_v32  ;;  %v2153_v15 = vmul.f32 %v2121_v0, %v3171_v53 }
 0x154   : > { %v3220_v46 = vadd.f32 %v1893_v57, %v1892_v1  ;;  %v1895_v4 = vsel %vm269_vm0, %v3215_v63, 0.0  ;;  %2601 = vpow2.f32 %v1762_v55  ;;  %v1760_v61 = vmul.f32 1.442695, %v1711_v59 }
 0x155   : > { %v2216_v42 = vmul.f32 %v2184_v21, %v2120_v41  ;;  %v2183_v29 = vsub.f32 2.0, %v2151_v9  ;;  %v1884_v37 = vrot.slane %v1883_v25, 2  ;;  %v2185_v7 = vsub.f32 2.0, %v2153_v15 }
 0x156   : > { %2603 = vrcp.f32 %v3220_v46  ;;  %v1896_v39 = vrot.slane %v1895_v4, 4  ;;  %v1607_v2 = vmax.f32 %v1605_v45, %v1606_v28  ;;  %v1611_v53 = vrot.slane %v3199_v58, 4 }
 0x157   : > { %2605 = vpow2.f32 %v1760_v61  ;;  %v2248_v33 = vmul.f32 %v3099_v3, %v2216_v42  ;;  %v2215_v40 = vmul.f32 %v2183_v29, %v2119_v14  ;;  %v1885_v27 = vadd.f32 %v1884_v37, %v1883_v25 }
 0x158   : > { %v2217_v8 = vmul.f32 %v2185_v7, %v2121_v0  ;;  %v1897_v13 = vadd.f32 %v1896_v39, %v1895_v4  ;;  %v1608_v6 = vrot.slane %v1607_v2, 1  ;;  %v3230_v34 = vadd.f32 %v2922_v10, %v2847_v36 }
 0x159   : > { %v2598_v52 = vpop.eup %2597  ;;  %v2247_v5 = vmul.f32 %v3105_v49, %v2215_v40  ;;  %v1886_v60 = vrot.slane %v1885_v27, 1  ;;  %v1612_v45 = vmax.f32 %v3199_v58, %v1611_v53  ;;  %v3236_v3 = vadd.f32 %v2928_v16, %v2847_v36 }
 0x15a   : > { %v3238_v28 = vpop.eup %2599  ;;  %v2249_v12 = vmul.f32 %v3111_v48, %v2217_v8  ;;  %v2058_v11 = vmul.f32 %v2598_v52, %v3205_v20  ;;  %v1898_v35 = vrot.slane %v1897_v13, 2  ;;  %v1609_v10 = vmax.f32 %v1607_v2, %v1608_v6 }
 0x15b   : > { %v2306_v19 = vcombine.low %v2246_v50, %v2247_v5  ;;  %v3242_v56 = vadd.f32 %v1886_v60, %v1885_v27  ;;  %v1902_v49 = vsel %vm269_vm0, %v3238_v28, 0.0  ;;  %v1613_v58 = vrot.slane %v1612_v45, 2 }
 0x15c   : > { %v2307_v51 = vcombine.low %v2248_v33, %v2249_v12  ;;  %v2090_v41 = vsub.f32 2.0, %v2058_v11  ;;  %v1899_v16 = vadd.f32 %v1898_v35, %v1897_v13  ;;  %v1903_v47 = vrot.slane %v1902_v49, 4 }
 0x15d   : > { %2338 = vst [vmem:[%s3121_s26 + $0x20] sm:$0xff] %v2306_v19  ;;  %2607 = vrcp.f32 %v3242_v56  ;;  %v1713_v48 = vsub.f32 %v3184_v31, %v1609_v10  ;;  %v1614_v1 = vmax.f32 %v1612_v45, %v1613_v58  ;;  %v1624_v62 = vsel %vm269_vm0, %v3230_v34, -inf }
 0x15e   : > { %v3251_v54 = vpop.eup %2601  ;;  %2339 = vst [vmem:[%s3121_s26 + $0x28] sm:$0xff] %v2307_v51  ;;  %v2122_v32 = vmul.f32 %v2598_v52, %v2090_v41  ;;  %v1900_v22 = vrot.slane %v1899_v16, 1  ;;  %v1904_v14 = vadd.f32 %v1903_v47, %v1902_v49  ;;  %v1625_v57 = vrot.slane %v1624_v62, 4 }
 0x15f   : > { %v1916_v50 = vsel %vm269_vm0, %v3251_v54, 0.0  ;;  %v1764_v0 = vmul.f32 1.442695, %v1713_v48  ;;  %v1615_v55 = vrot.slane %v1614_v1, 1  ;;  %v1617_v31 = vsel %vm269_vm0, %v3236_v3, -inf }
 0x160   : > { %v2604_v18 = vpop.eup %2603  ;;  %v2154_v21 = vmul.f32 %v2122_v32, %v3205_v20  ;;  %v3262_v25 = vadd.f32 %v1900_v22, %v1899_v16  ;;  %v1905_v15 = vrot.slane %v1904_v14, 2  ;;  %v1917_v4 = vrot.slane %v1916_v50, 4 }
 0x161   : > { %v3258_v59 = vpop.eup %2605  ;;  %v2060_v9 = vmul.f32 %v2604_v18, %v3220_v46  ;;  %2609 = vpow2.f32 %v1764_v0  ;;  %v1616_v42 = vmax.f32 %v1614_v1, %v1615_v55  ;;  %v1626_v33 = vmax.f32 %v1624_v62, %v1625_v57 }
 0x162   : > { %v1909_v61 = vsel %vm269_vm0, %v3258_v59, 0.0  ;;  %v2186_v29 = vsub.f32 2.0, %v2154_v21  ;;  %2611 = vrcp.f32 %v3262_v25  ;;  %v1906_v7 = vadd.f32 %v1905_v15, %v1904_v14 }
 0x163   : > { %v2092_v37 = vsub.f32 2.0, %v2060_v9  ;;  %v1918_v39 = vadd.f32 %v1917_v4, %v1916_v50  ;;  %v1910_v2 = vrot.slane %v1909_v61, 4  ;;  %v1714_v20 = vsub.f32 %v3188_v43, %v1616_v42 }
 0x164   : > { %v2218_v40 = vmul.f32 %v2186_v29, %v2122_v32  ;;  %v1907_v53 = vrot.slane %v1906_v7, 1  ;;  %v1618_v8 = vrot.slane %v1617_v31, 4  ;;  %v1627_v5 = vrot.slane %v1626_v33, 2 }
 0x165   : > { %v2124_v27 = vmul.f32 %v2604_v18, %v2092_v37  ;;  %v1919_v13 = vrot.slane %v1918_v39, 2  ;;  %v1911_v6 = vadd.f32 %v1910_v2, %v1909_v61  ;;  %v1766_v52 = vmul.f32 1.442695, %v1714_v20 }
 0x166   : > { %v3269_v60 = vmul.f32 %v3173_v44, %v2218_v40  ;;  %v3272_v12 = vadd.f32 %v1907_v53, %v1906_v7  ;;  %v1619_v11 = vmax.f32 %v1617_v31, %v1618_v8  ;;  %v1628_v19 = vmax.f32 %v1626_v33, %v1627_v5 }
 0x167   : > { %v2156_v45 = vmul.f32 %v2124_v27, %v3220_v46  ;;  %v2608_v35 = vpop.eup %2607  ;;  %v1920_v10 = vadd.f32 %v1919_v13, %v1918_v39  ;;  %v1912_v43 = vrot.slane %v1911_v6, 2  ;;  %2613 = vpow2.f32 %v1766_v52 }
 0x168   : > { %v2059_v58 = vmul.f32 %v2608_v35, %v3242_v56  ;;  %2615 = vrcp.f32 %v3272_v12  ;;  %v1620_v51 = vrot.slane %v1619_v11, 2  ;;  %v1629_v44 = vrot.slane %v1628_v19, 1 }
 0x169   : > { %v2188_v49 = vsub.f32 2.0, %v2156_v45  ;;  %v1921_v41 = vrot.slane %v1920_v10, 1  ;;  %v1913_v16 = vadd.f32 %v1912_v43, %v1911_v6  ;;  %v3278_v46 = vadd.f32 %v2930_v17, %v2847_v36 }
 0x16a   : > { %v2091_v48 = vsub.f32 2.0, %v2059_v58  ;;  %v1621_v1 = vmax.f32 %v1619_v11, %v1620_v51  ;;  %v3282_v62 = vadd.f32 %v2946_v23, %v2847_v36  ;;  %v1630_v57 = vmax.f32 %v1628_v19, %v1629_v44 }
 0x16b   : > { %v2220_v47 = vmul.f32 %v2188_v49, %v2124_v27  ;;  %v3284_v32 = vpop.eup %2609  ;;  %v3286_v22 = vadd.f32 %v1921_v41, %v1920_v10  ;;  %v1914_v14 = vrot.slane %v1913_v16, 1  ;;  %v1631_v18 = vsel %vm269_vm0, %v3278_v46, -inf }
 0x16c   : > { %v2612_v50 = vpop.eup %2611  ;;  %v2123_v0 = vmul.f32 %v2608_v35, %v2091_v48  ;;  %v1923_v55 = vsel %vm269_vm0, %v3284_v32, 0.0  ;;  %v1622_v31 = vrot.slane %v1621_v1, 1  ;;  %v1716_v4 = vsub.f32 %v3230_v34, %v1630_v57 }
 0x16d   : > { %v3291_v17 = vmul.f32 %v3193_v30, %v2220_v47  ;;  %v2061_v23 = vmul.f32 %v2612_v50, %v3262_v25  ;;  %2617 = vrcp.f32 %v3286_v22  ;;  %v3297_v21 = vadd.f32 %v1914_v14, %v1913_v16 }
 0x16e   : > { %v1924_v9 = vrot.slane %v1923_v55, 4  ;;  %v2155_v15 = vmul.f32 %v2123_v0, %v3242_v56  ;;  %v1623_v61 = vmax.f32 %v1621_v1, %v1622_v31  ;;  %v1632_v42 = vrot.slane %v1631_v18, 4 }
 0x16f   : > { %v2093_v30 = vsub.f32 2.0, %v2061_v23  ;;  %2619 = vrcp.f32 %v3297_v21  ;;  %v1638_v37 = vsel %vm269_vm0, %v3282_v62, -inf  ;;  %v1770_v39 = vmul.f32 1.442695, %v1716_v4 }
 0x170   : > { %v1925_v29 = vadd.f32 %v1924_v9, %v1923_v55  ;;  %v2187_v7 = vsub.f32 2.0, %v2155_v15  ;;  %v1715_v2 = vsub.f32 %v3236_v3, %v1623_v61  ;;  %v1633_v20 = vmax.f32 %v1631_v18, %v1632_v42 }
 0x171   : > { %v3305_v33 = vpop.eup %2613  ;;  %v2125_v40 = vmul.f32 %v2612_v50, %v2093_v30  ;;  %v1639_v27 = vrot.slane %v1638_v37, 4  ;;  %v3309_v34 = vadd.f32 %v2948_v24, %v2847_v36  ;;  %2621 = vpow2.f32 %v1770_v39 }
 0x172   : > { %v1926_v56 = vrot.slane %v1925_v29, 2  ;;  %v2616_v53 = vpop.eup %2615  ;;  %v2219_v8 = vmul.f32 %v2187_v7, %v2123_v0  ;;  %v1930_v13 = vsel %vm269_vm0, %v3305_v33, 0.0  ;;  %v1768_v6 = vmul.f32 1.442695, %v1715_v2 }
 0x173   : > { %v2157_v52 = vmul.f32 %v2125_v40, %v3262_v25  ;;  %v2062_v3 = vmul.f32 %v2616_v53, %v3272_v12  ;;  %v1931_v45 = vrot.slane %v1930_v13, 4  ;;  %v1634_v35 = vrot.slane %v1633_v20, 2 }
 0x174   : > { %v1927_v5 = vadd.f32 %v1926_v56, %v1925_v29  ;;  %v2251_v11 = vmul.f32 %v3207_v38, %v2219_v8  ;;  %2623 = vpow2.f32 %v1768_v6  ;;  %v1640_v24 = vmax.f32 %v1638_v37, %v1639_v27 }
 0x175   : > { %v2189_v10 = vsub.f32 2.0, %v2157_v52  ;;  %v2094_v43 = vsub.f32 2.0, %v2062_v3  ;;  %v1932_v49 = vadd.f32 %v1931_v45, %v1930_v13  ;;  %v1635_v51 = vmax.f32 %v1633_v20, %v1634_v35 }
 0x176   : > { %v1928_v19 = vrot.slane %v1927_v5, 1  ;;  %v2308_v58 = vcombine.low %v3269_v60, %v2251_v11  ;;  %v1641_v41 = vrot.slane %v1640_v24, 2  ;;  %v1652_v25 = vsel %vm269_vm0, %v3309_v34, -inf }
 0x177   : > { %v2618_v16 = vpop.eup %2617  ;;  %v2221_v44 = vmul.f32 %v2189_v10, %v2125_v40  ;;  %v2126_v47 = vmul.f32 %v2616_v53, %v2094_v43  ;;  %v1933_v38 = vrot.slane %v1932_v49, 2  ;;  %v1636_v14 = vrot.slane %v1635_v51, 1 }
 0x178   : > { %v3319_v48 = vadd.f32 %v1928_v19, %v1927_v5  ;;  %2340 = vst [vmem:[%s3121_s26 + $0x30] sm:$0xff] %v2308_v58  ;;  %v2064_v1 = vmul.f32 %v2618_v16, %v3286_v22  ;;  %v1642_v57 = vmax.f32 %v1640_v24, %v1641_v41  ;;  %v1653_v18 = vrot.slane %v1652_v25, 4 }
 0x179   : > { %v2620_v50 = vpop.eup %2619  ;;  %v2253_v60 = vmul.f32 %v3215_v63, %v2221_v44  ;;  %v2158_v0 = vmul.f32 %v2126_v47, %v3272_v12  ;;  %v1934_v55 = vadd.f32 %v1933_v38, %v1932_v49  ;;  %v1637_v9 = vmax.f32 %v1635_v51, %v1636_v14 }
 0x17a   : > { %2625 = vrcp.f32 %v3319_v48  ;;  %v2096_v31 = vsub.f32 2.0, %v2064_v1  ;;  %v2063_v23 = vmul.f32 %v2620_v50, %v3297_v21  ;;  %v1643_v15 = vrot.slane %v1642_v57, 1 }
 0x17b   : > { %v2309_v4 = vcombine.low %v3291_v17, %v2253_v60  ;;  %v2190_v61 = vsub.f32 2.0, %v2158_v0  ;;  %v1935_v42 = vrot.slane %v1934_v55, 1  ;;  %v1654_v30 = vmax.f32 %v1652_v25, %v1653_v18  ;;  %v3328_v29 = vpop.eup %2621  ;;  %v3507_v0 = vld [vmem:[#allocation3_spill] sm:$0xff] }
 0x17c   : > { %v2128_v37 = vmul.f32 %v2618_v16, %v2096_v31  ;;  %v2095_v63 = vsub.f32 2.0, %v2063_v23  ;;  %v1717_v12 = vsub.f32 %v3278_v46, %v1637_v9  ;;  %v1644_v7 = vmax.f32 %v1642_v57, %v1643_v15 }
 0x17d   : > { %2341 = vst [vmem:[%s3121_s26 + $0x38] sm:$0xff] %v2309_v4  ;;  %v2222_v39 = vmul.f32 %v2190_v61, %v2126_v47  ;;  %v3332_v2 = vadd.f32 %v1935_v42, %v1934_v55  ;;  %v1944_v20 = vsel %vm269_vm0, %v3328_v29, 0.0  ;;  %v1655_v40 = vrot.slane %v1654_v30, 2 }
 0x17e   : > { %v3336_v56 = vpop.eup %2623  ;;  %v2160_v17 = vmul.f32 %v2128_v37, %v3286_v22  ;;  %v2127_v27 = vmul.f32 %v2620_v50, %v2095_v63  ;;  %v1945_v53 = vrot.slane %v1944_v20, 4  ;;  %v1772_v8 = vmul.f32 1.442695, %v1717_v12 }
 0x17f   : > { %v2254_v13 = vmul.f32 %v3238_v28, %v2222_v39  ;;  %2627 = vrcp.f32 %v3332_v2  ;;  %v1937_v46 = vsel %vm269_vm0, %v3336_v56, 0.0  ;;  %v1718_v6 = vsub.f32 %v3282_v62, %v1644_v7 }
 0x180   : > { %v2192_v52 = vsub.f32 2.0, %v2160_v17  ;;  %v2159_v3 = vmul.f32 %v2127_v27, %v3297_v21  ;;  %v1946_v5 = vadd.f32 %v1945_v53, %v1944_v20  ;;  %v1938_v45 = vrot.slane %v1937_v46, 4  ;;  %v3506_v21 = vld [vmem:[#allocation2_spill] sm:$0xff] }
 0x181   : > { %2629 = vpow2.f32 %v1772_v8  ;;  %v1774_v11 = vmul.f32 1.442695, %v1718_v6  ;;  %v1656_v22 = vmax.f32 %v1654_v30, %v1655_v40  ;;  %v3347_v35 = vadd.f32 %v2950_v26, %v2847_v36 }
 0x182   : > { %v2224_v28 = vmul.f32 %v2192_v52, %v2128_v37  ;;  %v2191_v24 = vsub.f32 2.0, %v2159_v3  ;;  %v1947_v10 = vrot.slane %v1946_v5, 2  ;;  %v1939_v43 = vadd.f32 %v1938_v45, %v1937_v46 }
 0x183   : > { %2631 = vpow2.f32 %v1774_v11  ;;  %v1657_v49 = vrot.slane %v1656_v22, 1  ;;  %v1645_v62 = vsel %vm269_vm0, %v3347_v35, -inf  ;;  %v3353_v58 = vadd.f32 %v3506_v21, %v2847_v36 }
 0x184   : > { %v2626_v19 = vpop.eup %2625  ;;  %v3356_v51 = vmul.f32 %v3251_v54, %v2224_v28  ;;  %v2223_v41 = vmul.f32 %v2191_v24, %v2127_v27  ;;  %v1948_v25 = vadd.f32 %v1947_v10, %v1946_v5  ;;  %v1940_v16 = vrot.slane %v1939_v43, 2 }
 0x185   : > { %v2065_v26 = vmul.f32 %v2626_v19, %v3319_v48  ;;  %v1658_v44 = vmax.f32 %v1656_v22, %v1657_v49  ;;  %v1646_v47 = vrot.slane %v1645_v62, 4  ;;  %v1659_v38 = vsel %vm269_vm0, %v3353_v58, -inf }
 0x186   : > { %v2255_v1 = vmul.f32 %v3258_v59, %v2223_v41  ;;  %v1949_v57 = vrot.slane %v1948_v25, 1  ;;  %v1660_v18 = vrot.slane %v1659_v38, 4  ;;  %v1941_v50 = vadd.f32 %v1940_v16, %v1939_v43  ;;  %v3508_v43 = vld [vmem:[#allocation4_spill] sm:$0xff] }
 0x187   : > { %v2097_v14 = vsub.f32 2.0, %v2065_v26  ;;  %v1720_v54 = vsub.f32 %v3309_v34, %v1658_v44  ;;  %v1647_v60 = vmax.f32 %v1645_v62, %v1646_v47  ;;  %v3365_v55 = vadd.f32 %v3507_v0, %v2847_v36 }
 0x188   : > { %v2310_v31 = vcombine.low %v2254_v13, %v2255_v1  ;;  %v3367_v9 = vadd.f32 %v1949_v57, %v1948_v25  ;;  %v1661_v15 = vmax.f32 %v1659_v38, %v1660_v18  ;;  %v1942_v61 = vrot.slane %v1941_v50, 1 }
 0x189   : > { %v2129_v23 = vmul.f32 %v2626_v19, %v2097_v14  ;;  %v2628_v4 = vpop.eup %2627  ;;  %v1778_v59 = vmul.f32 1.442695, %v1720_v54  ;;  %v1648_v42 = vrot.slane %v1647_v60, 2  ;;  %v1666_v30 = vsel %vm269_vm0, %v3365_v55, -inf }
 0x18a   : > { %2342 = vst [vmem:[%s3121_s26 + $0x40] sm:$0xff] %v2310_v31  ;;  %v2066_v37 = vmul.f32 %v2628_v4, %v3332_v2  ;;  %2633 = vrcp.f32 %v3367_v9  ;;  %v1662_v63 = vrot.slane %v1661_v15, 2  ;;  %v3377_v7 = vadd.f32 %v1942_v61, %v1941_v50 }
 0x18b   : > { %v2161_v34 = vmul.f32 %v2129_v23, %v3319_v48  ;;  %v3375_v12 = vpop.eup %2629  ;;  %2635 = vpow2.f32 %v1778_v59  ;;  %v1649_v39 = vmax.f32 %v1647_v60, %v1648_v42  ;;  %v1667_v20 = vrot.slane %v1666_v30, 4 }
 0x18c   : > { %v2098_v17 = vsub.f32 2.0, %v2066_v37  ;;  %v1951_v27 = vsel %vm269_vm0, %v3375_v12, 0.0  ;;  %v1663_v53 = vmax.f32 %v1661_v15, %v1662_v63  ;;  %2637 = vrcp.f32 %v3377_v7 }
 0x18d   : > { %v2193_v40 = vsub.f32 2.0, %v2161_v34  ;;  %v3381_v8 = vpop.eup %2631  ;;  %v1952_v48 = vrot.slane %v1951_v27, 4  ;;  %v1650_v13 = vrot.slane %v1649_v39, 1  ;;  %v1668_v46 = vmax.f32 %v1666_v30, %v1667_v20 }
 0x18e   : > { %v2130_v52 = vmul.f32 %v2628_v4, %v2098_v17  ;;  %v1958_v3 = vsel %vm269_vm0, %v3381_v8, 0.0  ;;  %v1664_v5 = vrot.slane %v1663_v53, 1  ;;  %v3389_v19 = vadd.f32 %v3508_v43, %v2847_v36 }
 0x18f   : > { %v2225_v6 = vmul.f32 %v2193_v40, %v2129_v23  ;;  %v1953_v45 = vadd.f32 %v1952_v48, %v1951_v27  ;;  %v1959_v11 = vrot.slane %v1958_v3, 4  ;;  %v1651_v22 = vmax.f32 %v1649_v39, %v1650_v13  ;;  %v3510_v13 = vld [vmem:[#allocation6_spill] sm:$0xff] }
 0x190   : > { %v1669_v28 = vrot.slane %v1668_v46, 2  ;;  %v1665_v10 = vmax.f32 %v1663_v53, %v1664_v5  ;;  %v2162_v25 = vmul.f32 %v2130_v52, %v3332_v2 }
 0x191   : > { %v2257_v24 = vmul.f32 %v3284_v32, %v2225_v6  ;;  %v1954_v49 = vrot.slane %v1953_v45, 2  ;;  %v1960_v62 = vadd.f32 %v1959_v11, %v1958_v3  ;;  %v1719_v21 = vsub.f32 %v3347_v35, %v1651_v22  ;;  %v3509_v35 = vld [vmem:[#allocation5_spill] sm:$0xff] }
 0x192   : > { %v1670_v41 = vmax.f32 %v1668_v46, %v1669_v28  ;;  %v1721_v16 = vsub.f32 %v3353_v58, %v1665_v10  ;;  %v1680_v32 = vsel %vm269_vm0, %v3389_v19, -inf  ;;  %v3400_v50 = vadd.f32 %v3509_v35, %v2847_v36 }
 0x193   : > { %v2311_v26 = vcombine.low %v3356_v51, %v2257_v24  ;;  %v1955_v44 = vadd.f32 %v1954_v49, %v1953_v45  ;;  %v1961_v47 = vrot.slane %v1960_v62, 2  ;;  %v1776_v38 = vmul.f32 1.442695, %v1719_v21 }
 0x194   : > { %v1671_v1 = vrot.slane %v1670_v41, 1  ;;  %v2634_v14 = vpop.eup %2633  ;;  %v1780_v57 = vmul.f32 1.442695, %v1721_v16  ;;  %v1681_v18 = vrot.slane %v1680_v32, 4  ;;  %v2194_v23 = vsub.f32 2.0, %v2162_v25 }
 0x195   : > { %2343 = vst [vmem:[%s3121_s26 + $0x48] sm:$0xff] %v2311_v26  ;;  %v3402_v51 = vpop.eup %2635  ;;  %v2068_v2 = vmul.f32 %v2634_v14, %v3367_v9  ;;  %v1956_v58 = vrot.slane %v1955_v44, 1  ;;  %v1962_v54 = vadd.f32 %v1961_v47, %v1960_v62  ;;  %2639 = vpow2.f32 %v1776_v38 }
 0x196   : > { %v1972_v60 = vsel %vm269_vm0, %v3402_v51, 0.0  ;;  %2641 = vpow2.f32 %v1780_v57  ;;  %v1672_v0 = vmax.f32 %v1670_v41, %v1671_v1  ;;  %v2638_v31 = vpop.eup %2637  ;;  %v1682_v30 = vmax.f32 %v1680_v32, %v1681_v18 }
 0x197   : > { %v3407_v15 = vadd.f32 %v1956_v58, %v1955_v44  ;;  %v1963_v4 = vrot.slane %v1962_v54, 1  ;;  %v1973_v61 = vrot.slane %v1972_v60, 4  ;;  %v2067_v59 = vmul.f32 %v2638_v31, %v3377_v7 }
 0x198   : > { %v1722_v42 = vsub.f32 %v3365_v55, %v1672_v0  ;;  %v1673_v34 = vsel %vm269_vm0, %v3400_v50, -inf  ;;  %v2100_v37 = vsub.f32 2.0, %v2068_v2  ;;  %v1683_v17 = vrot.slane %v1682_v30, 2 }
 0x199   : > { %2643 = vrcp.f32 %v3407_v15  ;;  %v3414_v63 = vadd.f32 %v1963_v4, %v1962_v54  ;;  %v1974_v39 = vadd.f32 %v1973_v61, %v1972_v60  ;;  %v2099_v20 = vsub.f32 2.0, %v2067_v59 }
 0x19a   : > { %v1782_v40 = vmul.f32 1.442695, %v1722_v42  ;;  %v1674_v27 = vrot.slane %v1673_v34, 4  ;;  %v2226_v53 = vmul.f32 %v2194_v23, %v2130_v52  ;;  %v3418_v46 = vadd.f32 %v3510_v13, %v2847_v36 }
 0x19b   : > { %v1975_v48 = vrot.slane %v1974_v39, 2  ;;  %v2131_v55 = vmul.f32 %v2638_v31, %v2099_v20  ;;  %v1684_v6 = vmax.f32 %v1682_v30, %v1683_v17  ;;  %v2132_v5 = vmul.f32 %v2634_v14, %v2100_v37 }
 0x19c   : > { %2645 = vpow2.f32 %v1782_v40  ;;  %v1675_v3 = vmax.f32 %v1673_v34, %v1674_v27  ;;  %v1687_v11 = vsel %vm269_vm0, %v3418_v46, -inf  ;;  %v2258_v36 = vmul.f32 %v3305_v33, %v2226_v53 }
 0x19d   : > { %2647 = vrcp.f32 %v3414_v63  ;;  %v1976_v45 = vadd.f32 %v1975_v48, %v1974_v39  ;;  %v2163_v22 = vmul.f32 %v2131_v55, %v3377_v7  ;;  %v1685_v28 = vrot.slane %v1684_v6, 1 }
 0x19e   : > { %v1676_v52 = vrot.slane %v1675_v3, 2  ;;  %v1688_v43 = vrot.slane %v1687_v11, 4  ;;  %v2164_v25 = vmul.f32 %v2132_v5, %v3367_v9 }
 0x19f   : > { %v3424_v24 = vpop.eup %2639  ;;  %v1977_v10 = vrot.slane %v1976_v45, 1  ;;  %v2195_v62 = vsub.f32 2.0, %v2163_v22  ;;  %v1686_v41 = vmax.f32 %v1684_v6, %v1685_v28 }
 0x1a0   : > { %v3427_v49 = vpop.eup %2641  ;;  %v1965_v21 = vsel %vm269_vm0, %v3424_v24, 0.0  ;;  %v1677_v26 = vmax.f32 %v1675_v3, %v1676_v52  ;;  %v1689_v57 = vmax.f32 %v1687_v11, %v1688_v43  ;;  %v2196_v58 = vsub.f32 2.0, %v2164_v25 }
 0x1a1   : > { %v3432_v16 = vadd.f32 %v1977_v10, %v1976_v45  ;;  %v1966_v7 = vrot.slane %v1965_v21, 4  ;;  %v1979_v32 = vsel %vm269_vm0, %v3427_v49, 0.0  ;;  %v2227_v44 = vmul.f32 %v2195_v62, %v2131_v55 }
 0x1a2   : > { %v1980_v33 = vrot.slane %v1979_v32, 4  ;;  %v1724_v47 = vsub.f32 %v3389_v19, %v1686_v41  ;;  %v1678_v38 = vrot.slane %v1677_v26, 1  ;;  %v1690_v0 = vrot.slane %v1689_v57, 2 }
 0x1a3   : > { %v2644_v1 = vpop.eup %2643  ;;  %2649 = vrcp.f32 %v3432_v16  ;;  %v1967_v14 = vadd.f32 %v1966_v7, %v1965_v21  ;;  %v2259_v18 = vmul.f32 %v3336_v56, %v2227_v44  ;;  %v2228_v39 = vmul.f32 %v2196_v58, %v2132_v5 }
 0x1a4   : > { %v2069_v9 = vmul.f32 %v2644_v1, %v3407_v15  ;;  %v1981_v35 = vadd.f32 %v1980_v33, %v1979_v32  ;;  %v1786_v2 = vmul.f32 1.442695, %v1724_v47  ;;  %v1679_v60 = vmax.f32 %v1677_v26, %v1678_v38 }
 0x1a5   : > { %v1968_v54 = vrot.slane %v1967_v14, 2  ;;  %v2312_v19 = vcombine.low %v2258_v36, %v2259_v18  ;;  %v1691_v17 = vmax.f32 %v1689_v57, %v1690_v0  ;;  %v2260_v22 = vmul.f32 %v3328_v29, %v2228_v39 }
 0x1a6   : > { %v3440_v31 = vpop.eup %2645  ;;  %v2101_v23 = vsub.f32 2.0, %v2069_v9  ;;  %v1982_v4 = vrot.slane %v1981_v35, 2  ;;  %2651 = vpow2.f32 %v1786_v2  ;;  %v1723_v56 = vsub.f32 %v3400_v50, %v1679_v60 }
 0x1a7   : > { %v2648_v61 = vpop.eup %2647  ;;  %v1969_v59 = vadd.f32 %v1968_v54, %v1967_v14  ;;  %v1986_v42 = vsel %vm269_vm0, %v3440_v31, 0.0  ;;  %2344 = vst [vmem:[%s3121_s26 + $0x50] sm:$0xff] %v2312_v19  ;;  %v1692_v6 = vrot.slane %v1691_v17, 1 }
 0x1a8   : > { %v2133_v30 = vmul.f32 %v2644_v1, %v2101_v23  ;;  %v1983_v34 = vadd.f32 %v1982_v4, %v1981_v35  ;;  %v1987_v37 = vrot.slane %v1986_v42, 4  ;;  %v1784_v40 = vmul.f32 1.442695, %v1723_v56 }
 0x1a9   : > { %v1970_v20 = vrot.slane %v1969_v59, 1  ;;  %v2070_v53 = vmul.f32 %v2648_v61, %v3414_v63  ;;  %v1693_v5 = vmax.f32 %v1691_v17, %v1692_v6 }
 0x1aa   : > { %v2165_v27 = vmul.f32 %v2133_v30, %v3407_v15  ;;  %v1984_v48 = vrot.slane %v1983_v34, 1  ;;  %v1988_v13 = vadd.f32 %v1987_v37, %v1986_v42  ;;  %2653 = vpow2.f32 %v1784_v40 }
 0x1ab   : > { %v1971_v55 = vadd.f32 %v1970_v20, %v1969_v59  ;;  %v2102_v52 = vsub.f32 2.0, %v2070_v53  ;;  %v1725_v10 = vsub.f32 %v3418_v46, %v1693_v5 }
 0x1ac   : > { %v2197_v3 = vsub.f32 2.0, %v2165_v27  ;;  %v1985_v45 = vadd.f32 %v1984_v48, %v1983_v34  ;;  %v1989_v50 = vrot.slane %v1988_v13, 2 }
 0x1ad   : > { %v2650_v11 = vpop.eup %2649  ;;  %2655 = vrcp.f32 %v1971_v55  ;;  %v1788_v26 = vmul.f32 1.442695, %v1725_v10  ;;  %v2134_v29 = vmul.f32 %v2648_v61, %v2102_v52 }
 0x1ae   : > { %v2229_v28 = vmul.f32 %v2197_v3, %v2133_v30  ;;  %v2072_v36 = vmul.f32 %v2650_v11, %v3432_v16  ;;  %2657 = vrcp.f32 %v1985_v45  ;;  %v1990_v15 = vadd.f32 %v1989_v50, %v1988_v13 }
 0x1af   : > { %2659 = vpow2.f32 %v1788_v26  ;;  %v2166_v46 = vmul.f32 %v2134_v29, %v3414_v63 }
 0x1b0   : > { %v2261_v43 = vmul.f32 %v3375_v12, %v2229_v28  ;;  %v2104_v62 = vsub.f32 2.0, %v2072_v36  ;;  %v3452_v21 = vpop.eup %2651  ;;  %v1991_v41 = vrot.slane %v1990_v15, 1 }
 0x1b1   : > { %v2000_v32 = vsel %vm269_vm0, %v3452_v21, 0.0  ;;  %v2198_v60 = vsub.f32 2.0, %v2166_v46 }
 0x1b2   : > { %v2313_v25 = vcombine.low %v2260_v22, %v2261_v43  ;;  %v2136_v7 = vmul.f32 %v2650_v11, %v2104_v62  ;;  %v3456_v44 = vadd.f32 %v1991_v41, %v1990_v15  ;;  %v2001_v33 = vrot.slane %v2000_v32, 4 }
 0x1b3   : > { %v2230_v30 = vmul.f32 %v2198_v60, %v2134_v29 }
 0x1b4   : > { %2345 = vst [vmem:[%s3121_s26 + $0x58] sm:$0xff] %v2313_v25  ;;  %v3459_v47 = vpop.eup %2653  ;;  %2661 = vrcp.f32 %v3456_v44  ;;  %v2002_v12 = vadd.f32 %v2001_v33, %v2000_v32  ;;  %v2168_v38 = vmul.f32 %v2136_v7, %v3432_v16 }
 0x1b5   : > { %v1993_v1 = vsel %vm269_vm0, %v3459_v47, 0.0  ;;  %v2262_v50 = vmul.f32 %v3381_v8, %v2230_v30 }
 0x1b6   : > { %v2003_v57 = vrot.slane %v2002_v12, 2  ;;  %v1994_v18 = vrot.slane %v1993_v1, 4  ;;  %v2200_v0 = vsub.f32 2.0, %v2168_v38 }
 0x1b7   : > { %v2656_v14 = vpop.eup %2655 }
 0x1b8   : > { %v2658_v9 = vpop.eup %2657  ;;  %v2071_v35 = vmul.f32 %v2656_v14, %v1971_v55  ;;  %v2004_v58 = vadd.f32 %v2003_v57, %v2002_v12  ;;  %v1995_v54 = vadd.f32 %v1994_v18, %v1993_v1  ;;  %v2232_v34 = vmul.f32 %v2200_v0, %v2136_v7 }
 0x1b9   : > { %v2073_v2 = vmul.f32 %v2658_v9, %v1985_v45  ;;  %v3466_v59 = vpop.eup %2659 }
 0x1ba   : > { %v2103_v19 = vsub.f32 2.0, %v2071_v35  ;;  %v2005_v4 = vrot.slane %v2004_v58, 1  ;;  %v1996_v61 = vrot.slane %v1995_v54, 2  ;;  %v2007_v39 = vsel %vm269_vm0, %v3466_v59, 0.0 }
 0x1bb   : > { %v2105_v23 = vsub.f32 2.0, %v2073_v2  ;;  %v2008_v27 = vrot.slane %v2007_v39, 4 }
 0x1bc   : > { %v2135_v63 = vmul.f32 %v2656_v14, %v2103_v19  ;;  %v2006_v42 = vadd.f32 %v2005_v4, %v2004_v58  ;;  %v1997_v56 = vadd.f32 %v1996_v61, %v1995_v54 }
 0x1bd   : > { %v2137_v16 = vmul.f32 %v2658_v9, %v2105_v23  ;;  %v2009_v3 = vadd.f32 %v2008_v27, %v2007_v39 }
 0x1be   : > { %v2167_v37 = vmul.f32 %v2135_v63, %v1971_v55  ;;  %v2662_v20 = vpop.eup %2661  ;;  %2663 = vrcp.f32 %v2006_v42  ;;  %v1998_v17 = vrot.slane %v1997_v56, 1  ;;  %v2264_v55 = vmul.f32 %v3402_v51, %v2232_v34 }
 0x1bf   : > { %v2169_v40 = vmul.f32 %v2137_v16, %v1985_v45  ;;  %v2074_v48 = vmul.f32 %v2662_v20, %v3456_v44  ;;  %v2010_v5 = vrot.slane %v2009_v3, 2 }
 0x1c0   : > { %v2199_v53 = vsub.f32 2.0, %v2167_v37  ;;  %v1999_v6 = vadd.f32 %v1998_v17, %v1997_v56 }
 0x1c1   : > { %v2201_v13 = vsub.f32 2.0, %v2169_v40  ;;  %v2106_v28 = vsub.f32 2.0, %v2074_v48  ;;  %v2011_v36 = vadd.f32 %v2010_v5, %v2009_v3 }
 0x1c2   : > { %v2231_v11 = vmul.f32 %v2199_v53, %v2135_v63  ;;  %2665 = vrcp.f32 %v1999_v6 }
 0x1c3   : > { %v2233_v22 = vmul.f32 %v2201_v13, %v2137_v16  ;;  %v2012_v43 = vrot.slane %v2011_v36, 1  ;;  %v2138_v62 = vmul.f32 %v2662_v20, %v2106_v28 }
 0x1c4   : > { %v2263_v45 = vmul.f32 %v3424_v24, %v2231_v11 }
 0x1c5   : > { %v2265_v52 = vmul.f32 %v3427_v49, %v2233_v22  ;;  %v2013_v8 = vadd.f32 %v2012_v43, %v2011_v36  ;;  %v2170_v51 = vmul.f32 %v2138_v62, %v3456_v44 }
 0x1c6   : > { %v2314_v15 = vcombine.low %v2262_v50, %v2263_v45 }
 0x1c7   : > { %v2315_v10 = vcombine.low %v2264_v55, %v2265_v52  ;;  %2667 = vrcp.f32 %v2013_v8  ;;  %v2202_v24 = vsub.f32 2.0, %v2170_v51 }
 0x1c8   : > { %2346 = vst [vmem:[%s3121_s26 + $0x60] sm:$0xff] %v2314_v15  ;;  %v2664_v41 = vpop.eup %2663 }
 0x1c9   : > { %2347 = vst [vmem:[%s3121_s26 + $0x68] sm:$0xff] %v2315_v10  ;;  %v2076_v26 = vmul.f32 %v2664_v41, %v2006_v42  ;;  %v2234_v12 = vmul.f32 %v2202_v24, %v2138_v62 }
 0x1cb   : > { %v2108_v25 = vsub.f32 2.0, %v2076_v26  ;;  %v2266_v18 = vmul.f32 %v3440_v31, %v2234_v12 }
 0x1cc   : > { %v2666_v29 = vpop.eup %2665 }
 0x1cd   : > { %v2075_v7 = vmul.f32 %v2666_v29, %v1999_v6  ;;  %v2140_v32 = vmul.f32 %v2664_v41, %v2108_v25 }
 0x1cf   : > { %v2107_v33 = vsub.f32 2.0, %v2075_v7  ;;  %v2172_v46 = vmul.f32 %v2140_v32, %v2006_v42 }
 0x1d1   : > { %v2139_v49 = vmul.f32 %v2666_v29, %v2107_v33  ;;  %v2668_v1 = vpop.eup %2667  ;;  %v2204_v9 = vsub.f32 2.0, %v2172_v46 }
 0x1d2   : > { %v2077_v57 = vmul.f32 %v2668_v1, %v2013_v8 }
 0x1d3   : > { %v2171_v38 = vmul.f32 %v2139_v49, %v1999_v6  ;;  %v2236_v54 = vmul.f32 %v2204_v9, %v2140_v32 }
 0x1d4   : > { %v2109_v44 = vsub.f32 2.0, %v2077_v57 }
 0x1d5   : > { %v2203_v14 = vsub.f32 2.0, %v2171_v38  ;;  %v2268_v23 = vmul.f32 %v3452_v21, %v2236_v54 }
 0x1d6   : > { %v2141_v58 = vmul.f32 %v2668_v1, %v2109_v44 }
 0x1d7   : > { %v2235_v35 = vmul.f32 %v2203_v14, %v2139_v49 }
 0x1d8   : > { %v2173_v0 = vmul.f32 %v2141_v58, %v2013_v8 }
 0x1d9   : > { %v2267_v2 = vmul.f32 %v3459_v47, %v2235_v35 }
 0x1da   : > { %v2205_v19 = vsub.f32 2.0, %v2173_v0 }
 0x1db   : > { %v2316_v60 = vcombine.low %v2266_v18, %v2267_v2 }
 0x1dc   : > { %v2237_v4 = vmul.f32 %v2205_v19, %v2141_v58 }
 0x1dd   : > { %2348 = vst [vmem:[%s3121_s26 + $0x70] sm:$0xff] %v2316_v60 }
 0x1de   : > { %v2269_v61 = vmul.f32 %v3466_v59, %v2237_v4 }
 0x1e0   : > { %v2317_v63 = vcombine.low %v2268_v23, %v2269_v61 }
 0x1e2   : > { %2349 = vst [vmem:[%s3121_s26 + $0x78] sm:$0xff] %v2317_v63 }
 0x1e3 PF: > { %s13_s14 = sadd.s32 1, %s2691_s14   ;;  %s3511_s12 = smov %s2687_s13 }
 0x1e4   : > { %p10_p5 = scmp.ge.s32.totalorder %s13_s14, 4   ;;  %s3512_s13 = smov %s3514_s15 }
 0x1e6   :  { %12 = sbr.rel (!%p10_p5) target bundleno = 2 (0x2), region = 62 }

</bundles_post_ra>
